<compile_context>
chip_gen: v5e
topology: v5e:2x2
jax: 0.10.0
libtpu: 0.0.40
codegen_flags: <defaults>
</compile_context>

<pallas_src>
import jax
import jax.numpy as jnp
from jax.experimental import pallas as pl
from jax.experimental.pallas import tpu as pltpu

# ---------------- small synthetic config ----------------
B, S = 2, 8            # batch, seq_len
H = 32                 # config.hidden_size
NH, HD = 2, 16         # attention heads, head dim
FFN = 64               # intermediate size
NLAYERS = 2            # encoder layers
VOCAB = 100            # vocab size
NUM_TRIGGERS = 9       # len(all_triggers)
FC_HIDDEN = 256        # fc hidden size (as in the module)
TPAD = 128             # lane-dense padded logits width


# ---------------- in-kernel helpers ----------------
def _layernorm(x, g, b):
    mu = jnp.mean(x, axis=-1, keepdims=True)
    var = jnp.mean(jnp.square(x - mu), axis=-1, keepdims=True)
    return (x - mu) * jax.lax.rsqrt(var + 1e-12) * g + b


def _gelu(x):
    # TODO(synk): tanh-approx GELU; HF BERT default is exact erf GELU (tiny numeric diff).
    return 0.5 * x * (1.0 + jnp.tanh(0.7978845608028654 * (x + 0.044715 * x * x * x)))


# ---------------- fused forward kernel (one batch row per grid step) ----------------
def fused_forward_kernel(ids_ref, mask_ref,
                         we_ref, pe_ref, eg_ref, eb_ref,
                         wq_ref, wk_ref, wv_ref, wo_ref,
                         bq_ref, bk_ref, bv_ref, bo_ref,
                         g1_ref, be1_ref, w1_ref, b1_ref, w2_ref, b2_ref,
                         g2_ref, be2_ref,
                         fw1_ref, fb1_ref, fw2_ref, fb2_ref,
                         logits_ref, pred_ref):
    # ---- embedding lookup as one-hot matmul (no XLA gather, no HBM round-trip) ----
    ids = ids_ref[0]                                              # [S, 1] int32
    onehot = (jax.lax.broadcasted_iota(jnp.int32, (S, VOCAB), 1) == ids
              ).astype(jnp.float32)                               # [S, VOCAB]
    x = jnp.dot(onehot, we_ref[...], preferred_element_type=jnp.float32)
    x = x + pe_ref[...]                                           # [S, H]
    x = _layernorm(x, eg_ref[...], eb_ref[...])

    # additive attention mask built from compact int form
    add_mask = jnp.where(mask_ref[0] != 0, 0.0, -1e9).astype(jnp.float32)  # [1, S]

    scale = 1.0 / (HD ** 0.5)
    for l in range(NLAYERS):                                      # static unroll, 2 layers
        wq = wq_ref[l]; wk = wk_ref[l]; wv = wv_ref[l]; wo = wo_ref[l]
        q = jnp.dot(x, wq, preferred_element_type=jnp.float32) + bq_ref[l]
        k = jnp.dot(x, wk, preferred_element_type=jnp.float32) + bk_ref[l]
        v = jnp.dot(x, wv, preferred_element_type=jnp.float32) + bv_ref[l]

        attn = jnp.zeros((S, H), jnp.float32)
        for h in range(NH):                                       # static unroll over heads
            lo = h * HD
            qh = q[:, lo:lo + HD]
            kh = k[:, lo:lo + HD]
            vh = v[:, lo:lo + HD]
            sc = jnp.einsum('qd,kd->qk', qh, kh,
                            preferred_element_type=jnp.float32) * scale + add_mask
            sc = sc - jnp.max(sc, axis=-1, keepdims=True)
            p = jnp.exp(sc)
            p = p * pl.reciprocal(jnp.sum(p, axis=-1, keepdims=True), approx=True)
            ctx_h = jnp.einsum('qk,kd->qd', p, vh,
                               preferred_element_type=jnp.float32)
            # fold head directly through its slice of the output projection
            # (no jnp.concatenate / XLU lane repack)
            attn = attn + jnp.dot(ctx_h, wo[lo:lo + HD, :],
                                  preferred_element_type=jnp.float32)
        attn = attn + bo_ref[l]

        h1 = _layernorm(x + attn, g1_ref[l], be1_ref[l])
        f = _gelu(jnp.dot(h1, w1_ref[l], preferred_element_type=jnp.float32) + b1_ref[l])
        f = jnp.dot(f, w2_ref[l], preferred_element_type=jnp.float32) + b2_ref[l]
        x = _layernorm(h1 + f, g2_ref[l], be2_ref[l])

    # ---- classifier head: Linear(H,256) -> Dropout(identity in eval) -> Linear(256, T) ----
    # TODO(synk): nn.Dropout(0.5) is identity in eval mode; training-mode dropout not applied.
    hfc = jnp.dot(x, fw1_ref[...], preferred_element_type=jnp.float32) + fb1_ref[...]
    logits = jnp.dot(hfc, fw2_ref[...], preferred_element_type=jnp.float32) + fb2_ref[...]
    logits_ref[0] = logits                                        # [S, TPAD] lane-dense store

    # argmax(-1) with first-occurrence tie-break (padded lanes carry -1e30 bias)
    lmax = jnp.max(logits, axis=-1, keepdims=True)
    iota = jax.lax.broadcasted_iota(jnp.int32, logits.shape, 1)
    pred = jnp.min(jnp.where(logits == lmax, iota, TPAD), axis=-1, keepdims=True)
    pred_ref[0] = pred.astype(jnp.int32)                          # [S, 1]


# ---------------- parameter init (deterministic, synthetic) ----------------
def init_params(key):
    keys = iter(jax.random.split(key, 64))

    def nrm(shape, scale=0.02):
        return (scale * jax.random.normal(next(keys), shape)).astype(jnp.float32)

    p = {
        'word_emb': nrm((VOCAB, H)),
        'pos_emb': nrm((S, H)),
        'emb_g': jnp.ones((1, H), jnp.float32),
        'emb_b': jnp.zeros((1, H), jnp.float32),
        # stacked per-layer weights (leading layer dim, indexed statically in-kernel)
        'wq': nrm((NLAYERS, H, H)), 'wk': nrm((NLAYERS, H, H)),
        'wv': nrm((NLAYERS, H, H)), 'wo': nrm((NLAYERS, H, H)),
        'bq': nrm((NLAYERS, 1, H)), 'bk': nrm((NLAYERS, 1, H)),
        'bv': nrm((NLAYERS, 1, H)), 'bo': nrm((NLAYERS, 1, H)),
        'g1': jnp.ones((NLAYERS, 1, H), jnp.float32),
        'be1': jnp.zeros((NLAYERS, 1, H), jnp.float32),
        'w1': nrm((NLAYERS, H, FFN)), 'b1': nrm((NLAYERS, 1, FFN)),
        'w2': nrm((NLAYERS, FFN, H)), 'b2': nrm((NLAYERS, 1, H)),
        'g2': jnp.ones((NLAYERS, 1, H), jnp.float32),
        'be2': jnp.zeros((NLAYERS, 1, H), jnp.float32),
        'fc_w1': nrm((H, FC_HIDDEN)), 'fc_b1': nrm((1, FC_HIDDEN)),
    }
    # classifier projection, padded to a lane-dense 128 columns; padded bias is a
    # huge negative so argmax never selects a padded lane.
    fc_w2 = nrm((FC_HIDDEN, NUM_TRIGGERS))
    fc_b2 = nrm((1, NUM_TRIGGERS))
    p['fc_w2p'] = jnp.pad(fc_w2, ((0, 0), (0, TPAD - NUM_TRIGGERS)))
    p['fc_b2p'] = jnp.concatenate(
        [fc_b2, jnp.full((1, TPAD - NUM_TRIGGERS), -1e30, jnp.float32)], axis=1)
    return p


# ---------------- pallas_call wrapper ----------------
def _batch_spec(shape):
    n = len(shape)
    return pl.BlockSpec((1,) + tuple(shape[1:]), lambda b: (b,) + (0,) * (n - 1))


def _shared_spec(shape):
    return pl.BlockSpec(tuple(shape), lambda b: (0,) * len(shape))


def _forward_impl(params, context, mask, label):
    ids3 = context.astype(jnp.int32)[:, :, None]      # [B, S, 1]
    mask3 = mask.astype(jnp.int32)[:, None, :]        # [B, 1, S]

    p = params
    inputs = [
        ids3, mask3,
        p['word_emb'], p['pos_emb'], p['emb_g'], p['emb_b'],
        p['wq'], p['wk'], p['wv'], p['wo'],
        p['bq'], p['bk'], p['bv'], p['bo'],
        p['g1'], p['be1'], p['w1'], p['b1'], p['w2'], p['b2'],
        p['g2'], p['be2'],
        p['fc_w1'], p['fc_b1'], p['fc_w2p'], p['fc_b2p'],
    ]
    in_specs = [_batch_spec(ids3.shape), _batch_spec(mask3.shape)] + \
               [_shared_spec(a.shape) for a in inputs[2:]]

    logits_pad, pred = pl.pallas_call(
        fused_forward_kernel,
        grid=(B,),
        in_specs=in_specs,
        out_specs=(pl.BlockSpec((1, S, TPAD), lambda b: (b, 0, 0)),
                   pl.BlockSpec((1, S, 1), lambda b: (b, 0, 0))),
        out_shape=(jax.ShapeDtypeStruct((B, S, TPAD), jnp.float32),
                   jax.ShapeDtypeStruct((B, S, 1), jnp.int32)),
        compiler_params=pltpu.CompilerParams(
            dimension_semantics=("parallel",)),   # batch across TCs on v7x
    )(*inputs)

    logits = logits_pad[:, :, :NUM_TRIGGERS]
    trigger_hat_2d = pred[:, :, 0]
    return logits, trigger_hat_2d, label


_forward_jit = jax.jit(_forward_impl)


def model_forward(params, x_tuple, label):
    context = x_tuple[0]
    mask = x_tuple[2]
    return _forward_jit(params, context, mask, label)
# TODO(synk): self.lstm (nn.LSTM) and self.tri_CRF1 (CRF) are constructed in
# __init__ but never used in forward(); intentionally not implemented.


if __name__ == "__main__":
    key = jax.random.PRNGKey(0)
    pkey, k_ctx, k_lab = jax.random.split(key, 3)
    params = init_params(pkey)

    context = jax.random.randint(k_ctx, (B, S), 0, VOCAB, dtype=jnp.int32)   # x[0]
    segment = jnp.zeros((B, S), jnp.int32)                                   # x[1] (unused)
    mask = jnp.ones((B, S), jnp.int32)                                       # x[2]
    label = jax.random.randint(k_lab, (B, S), 0, NUM_TRIGGERS, dtype=jnp.int32)

    logits, trigger_hat_2d, triggers_y_2d = model_forward(
        params, (context, segment, mask), label)
    jax.block_until_ready((logits, trigger_hat_2d, triggers_y_2d))

    assert logits.shape == (B, S, NUM_TRIGGERS)
    assert trigger_hat_2d.shape == (B, S)
    assert triggers_y_2d.shape == (B, S)
    print("KERNEL_OK")
</pallas_src>

<mosaic_0001>
module attributes {stable_mosaic.version = 11 : i64} {
  func.func @fused_forward_kernel(%arg0: i32, %arg1: memref<1x8x1xi32, #tpu.memory_space<vmem>>, %arg2: memref<1x1x8xi32, #tpu.memory_space<vmem>>, %arg3: memref<100x32xf32, #tpu.memory_space<vmem>>, %arg4: memref<8x32xf32, #tpu.memory_space<vmem>>, %arg5: memref<1x32xf32, #tpu.memory_space<vmem>>, %arg6: memref<1x32xf32, #tpu.memory_space<vmem>>, %arg7: memref<2x32x32xf32, #tpu.memory_space<vmem>>, %arg8: memref<2x32x32xf32, #tpu.memory_space<vmem>>, %arg9: memref<2x32x32xf32, #tpu.memory_space<vmem>>, %arg10: memref<2x32x32xf32, #tpu.memory_space<vmem>>, %arg11: memref<2x1x32xf32, #tpu.memory_space<vmem>>, %arg12: memref<2x1x32xf32, #tpu.memory_space<vmem>>, %arg13: memref<2x1x32xf32, #tpu.memory_space<vmem>>, %arg14: memref<2x1x32xf32, #tpu.memory_space<vmem>>, %arg15: memref<2x1x32xf32, #tpu.memory_space<vmem>>, %arg16: memref<2x1x32xf32, #tpu.memory_space<vmem>>, %arg17: memref<2x32x64xf32, #tpu.memory_space<vmem>>, %arg18: memref<2x1x64xf32, #tpu.memory_space<vmem>>, %arg19: memref<2x64x32xf32, #tpu.memory_space<vmem>>, %arg20: memref<2x1x32xf32, #tpu.memory_space<vmem>>, %arg21: memref<2x1x32xf32, #tpu.memory_space<vmem>>, %arg22: memref<2x1x32xf32, #tpu.memory_space<vmem>>, %arg23: memref<32x256xf32, #tpu.memory_space<vmem>>, %arg24: memref<1x256xf32, #tpu.memory_space<vmem>>, %arg25: memref<256x128xf32, #tpu.memory_space<vmem>>, %arg26: memref<1x128xf32, #tpu.memory_space<vmem>>, %arg27: memref<1x8x128xf32, #tpu.memory_space<vmem>>, %arg28: memref<1x8x1xi32, #tpu.memory_space<vmem>>) attributes {dimension_semantics = [#tpu.dimension_semantics<parallel>], iteration_bounds = array<i64: 2>, scalar_prefetch = 0 : i64, scratch_operands = 0 : i64, tpu.core_type = #tpu.core_type<tc>, window_params = [{transform_indices = @transform_0, window_bounds = array<i64: 1, 8, 1>}, {transform_indices = @transform_1, window_bounds = array<i64: 1, 1, 8>}, {pipeline_mode = #tpu.pipeline_mode<synchronous>, transform_indices = @transform_2, window_bounds = array<i64: 100, 32>}, {pipeline_mode = #tpu.pipeline_mode<synchronous>, transform_indices = @transform_3, window_bounds = array<i64: 8, 32>}, {pipeline_mode = #tpu.pipeline_mode<synchronous>, transform_indices = @transform_4, window_bounds = array<i64: 1, 32>}, {pipeline_mode = #tpu.pipeline_mode<synchronous>, transform_indices = @transform_5, window_bounds = array<i64: 1, 32>}, {pipeline_mode = #tpu.pipeline_mode<synchronous>, transform_indices = @transform_6, window_bounds = array<i64: 2, 32, 32>}, {pipeline_mode = #tpu.pipeline_mode<synchronous>, transform_indices = @transform_7, window_bounds = array<i64: 2, 32, 32>}, {pipeline_mode = #tpu.pipeline_mode<synchronous>, transform_indices = @transform_8, window_bounds = array<i64: 2, 32, 32>}, {pipeline_mode = #tpu.pipeline_mode<synchronous>, transform_indices = @transform_9, window_bounds = array<i64: 2, 32, 32>}, {pipeline_mode = #tpu.pipeline_mode<synchronous>, transform_indices = @transform_10, window_bounds = array<i64: 2, 1, 32>}, {pipeline_mode = #tpu.pipeline_mode<synchronous>, transform_indices = @transform_11, window_bounds = array<i64: 2, 1, 32>}, {pipeline_mode = #tpu.pipeline_mode<synchronous>, transform_indices = @transform_12, window_bounds = array<i64: 2, 1, 32>}, {pipeline_mode = #tpu.pipeline_mode<synchronous>, transform_indices = @transform_13, window_bounds = array<i64: 2, 1, 32>}, {pipeline_mode = #tpu.pipeline_mode<synchronous>, transform_indices = @transform_14, window_bounds = array<i64: 2, 1, 32>}, {pipeline_mode = #tpu.pipeline_mode<synchronous>, transform_indices = @transform_15, window_bounds = array<i64: 2, 1, 32>}, {pipeline_mode = #tpu.pipeline_mode<synchronous>, transform_indices = @transform_16, window_bounds = array<i64: 2, 32, 64>}, {pipeline_mode = #tpu.pipeline_mode<synchronous>, transform_indices = @transform_17, window_bounds = array<i64: 2, 1, 64>}, {pipeline_mode = #tpu.pipeline_mode<synchronous>, transform_indices = @transform_18, window_bounds = array<i64: 2, 64, 32>}, {pipeline_mode = #tpu.pipeline_mode<synchronous>, transform_indices = @transform_19, window_bounds = array<i64: 2, 1, 32>}, {pipeline_mode = #tpu.pipeline_mode<synchronous>, transform_indices = @transform_20, window_bounds = array<i64: 2, 1, 32>}, {pipeline_mode = #tpu.pipeline_mode<synchronous>, transform_indices = @transform_21, window_bounds = array<i64: 2, 1, 32>}, {pipeline_mode = #tpu.pipeline_mode<synchronous>, transform_indices = @transform_22, window_bounds = array<i64: 32, 256>}, {pipeline_mode = #tpu.pipeline_mode<synchronous>, transform_indices = @transform_23, window_bounds = array<i64: 1, 256>}, {pipeline_mode = #tpu.pipeline_mode<synchronous>, transform_indices = @transform_24, window_bounds = array<i64: 256, 128>}, {pipeline_mode = #tpu.pipeline_mode<synchronous>, transform_indices = @transform_25, window_bounds = array<i64: 1, 128>}, {transform_indices = @transform_26, window_bounds = array<i64: 1, 8, 128>}, {transform_indices = @transform_27, window_bounds = array<i64: 1, 8, 1>}]} {
    %c0 = arith.constant 0 : index
    %c0_0 = arith.constant 0 : index
    %c0_1 = arith.constant 0 : index
    %0 = vector.load %arg1[%c0, %c0_0, %c0_1] : memref<1x8x1xi32, #tpu.memory_space<vmem>>, vector<1x8x1xi32>
    %1 = vector.shape_cast %0 : vector<1x8x1xi32> to vector<8x1xi32>
    %2 = tpu.iota {dimensions = array<i32: 1>} : vector<8x100xi32>
    %3 = vector.broadcast %1 : vector<8x1xi32> to vector<8x100xi32>
    %4 = arith.cmpi eq, %2, %3 : vector<8x100xi32>
    %5 = arith.extui %4 : vector<8x100xi1> to vector<8x100xi32>
    %6 = arith.sitofp %5 : vector<8x100xi32> to vector<8x100xf32>
    %c0_2 = arith.constant 0 : index
    %c0_3 = arith.constant 0 : index
    %7 = vector.load %arg3[%c0_2, %c0_3] : memref<100x32xf32, #tpu.memory_space<vmem>>, vector<100x32xf32>
    %cst = arith.constant dense<0.000000e+00> : vector<8x32xf32>
    %8 = tpu.matmul %6, %7, %cst {dimension_numbers = #tpu.dot_dimension_numbers<[1], [0], [0], [1], [0, 0, 1, 1], [], []>} : vector<8x100xf32>, vector<100x32xf32>, vector<8x32xf32> -> vector<8x32xf32>
    %c0_4 = arith.constant 0 : index
    %c0_5 = arith.constant 0 : index
    %9 = vector.load %arg4[%c0_4, %c0_5] : memref<8x32xf32, #tpu.memory_space<vmem>>, vector<8x32xf32>
    %10 = arith.addf %8, %9 : vector<8x32xf32>
    %c0_6 = arith.constant 0 : index
    %c0_7 = arith.constant 0 : index
    %11 = vector.load %arg5[%c0_6, %c0_7] : memref<1x32xf32, #tpu.memory_space<vmem>>, vector<1x32xf32>
    %c0_8 = arith.constant 0 : index
    %c0_9 = arith.constant 0 : index
    %12 = vector.load %arg6[%c0_8, %c0_9] : memref<1x32xf32, #tpu.memory_space<vmem>>, vector<1x32xf32>
    %cst_10 = arith.constant dense<0.000000e+00> : vector<8xf32>
    %13 = vector.multi_reduction <add>, %10, %cst_10 [1] : vector<8x32xf32> to vector<8xf32>
    %14 = vector.shape_cast %13 : vector<8xf32> to vector<8x1xf32>
    %cst_11 = arith.constant 3.200000e+01 : f32
    %15 = vector.broadcast %cst_11 : f32 to vector<8x1xf32>
    %16 = arith.divf %14, %15 : vector<8x1xf32>
    %17 = vector.broadcast %16 : vector<8x1xf32> to vector<8x32xf32>
    %18 = arith.subf %10, %17 : vector<8x32xf32>
    %19 = arith.mulf %18, %18 : vector<8x32xf32>
    %cst_12 = arith.constant dense<0.000000e+00> : vector<8xf32>
    %20 = vector.multi_reduction <add>, %19, %cst_12 [1] : vector<8x32xf32> to vector<8xf32>
    %21 = vector.shape_cast %20 : vector<8xf32> to vector<8x1xf32>
    %cst_13 = arith.constant 3.200000e+01 : f32
    %22 = vector.broadcast %cst_13 : f32 to vector<8x1xf32>
    %23 = arith.divf %21, %22 : vector<8x1xf32>
    %24 = vector.broadcast %16 : vector<8x1xf32> to vector<8x32xf32>
    %25 = arith.subf %10, %24 : vector<8x32xf32>
    %cst_14 = arith.constant 9.99999996E-13 : f32
    %26 = vector.broadcast %cst_14 : f32 to vector<8x1xf32>
    %27 = arith.addf %23, %26 : vector<8x1xf32>
    %28 = math.rsqrt %27 : vector<8x1xf32>
    %29 = vector.broadcast %28 : vector<8x1xf32> to vector<8x32xf32>
    %30 = arith.mulf %25, %29 : vector<8x32xf32>
    %31 = vector.broadcast %11 : vector<1x32xf32> to vector<8x32xf32>
    %32 = arith.mulf %30, %31 : vector<8x32xf32>
    %33 = vector.broadcast %12 : vector<1x32xf32> to vector<8x32xf32>
    %34 = arith.addf %32, %33 : vector<8x32xf32>
    %c0_15 = arith.constant 0 : index
    %c0_16 = arith.constant 0 : index
    %c0_17 = arith.constant 0 : index
    %35 = vector.load %arg2[%c0_15, %c0_16, %c0_17] : memref<1x1x8xi32, #tpu.memory_space<vmem>>, vector<1x1x8xi32>
    %36 = vector.shape_cast %35 : vector<1x1x8xi32> to vector<1x8xi32>
    %c0_i32 = arith.constant 0 : i32
    %37 = vector.broadcast %c0_i32 : i32 to vector<1x8xi32>
    %38 = arith.cmpi ne, %36, %37 : vector<1x8xi32>
    %cst_18 = arith.constant 0.000000e+00 : f32
    %cst_19 = arith.constant -1.000000e+09 : f32
    %39 = vector.broadcast %cst_18 : f32 to vector<1x8xf32>
    %40 = vector.broadcast %cst_19 : f32 to vector<1x8xf32>
    %41 = arith.select %38, %39, %40 : vector<1x8xi1>, vector<1x8xf32>
    %c0_20 = arith.constant 0 : index
    %c0_21 = arith.constant 0 : index
    %c0_22 = arith.constant 0 : index
    %42 = vector.load %arg7[%c0_20, %c0_21, %c0_22] : memref<2x32x32xf32, #tpu.memory_space<vmem>>, vector<1x32x32xf32>
    %43 = vector.shape_cast %42 : vector<1x32x32xf32> to vector<32x32xf32>
    %c0_23 = arith.constant 0 : index
    %c0_24 = arith.constant 0 : index
    %c0_25 = arith.constant 0 : index
    %44 = vector.load %arg8[%c0_23, %c0_24, %c0_25] : memref<2x32x32xf32, #tpu.memory_space<vmem>>, vector<1x32x32xf32>
    %45 = vector.shape_cast %44 : vector<1x32x32xf32> to vector<32x32xf32>
    %c0_26 = arith.constant 0 : index
    %c0_27 = arith.constant 0 : index
    %c0_28 = arith.constant 0 : index
    %46 = vector.load %arg9[%c0_26, %c0_27, %c0_28] : memref<2x32x32xf32, #tpu.memory_space<vmem>>, vector<1x32x32xf32>
    %47 = vector.shape_cast %46 : vector<1x32x32xf32> to vector<32x32xf32>
    %c0_29 = arith.constant 0 : index
    %c0_30 = arith.constant 0 : index
    %c0_31 = arith.constant 0 : index
    %48 = vector.load %arg10[%c0_29, %c0_30, %c0_31] : memref<2x32x32xf32, #tpu.memory_space<vmem>>, vector<1x32x32xf32>
    %49 = vector.shape_cast %48 : vector<1x32x32xf32> to vector<32x32xf32>
    %cst_32 = arith.constant dense<0.000000e+00> : vector<8x32xf32>
    %50 = tpu.matmul %34, %43, %cst_32 {dimension_numbers = #tpu.dot_dimension_numbers<[1], [0], [0], [1], [0, 0, 1, 1], [], []>} : vector<8x32xf32>, vector<32x32xf32>, vector<8x32xf32> -> vector<8x32xf32>
    %c0_33 = arith.constant 0 : index
    %c0_34 = arith.constant 0 : index
    %c0_35 = arith.constant 0 : index
    %51 = vector.load %arg11[%c0_33, %c0_34, %c0_35] : memref<2x1x32xf32, #tpu.memory_space<vmem>>, vector<1x1x32xf32>
    %52 = vector.shape_cast %51 : vector<1x1x32xf32> to vector<1x32xf32>
    %53 = vector.broadcast %52 : vector<1x32xf32> to vector<8x32xf32>
    %54 = arith.addf %50, %53 : vector<8x32xf32>
    %cst_36 = arith.constant dense<0.000000e+00> : vector<8x32xf32>
    %55 = tpu.matmul %34, %45, %cst_36 {dimension_numbers = #tpu.dot_dimension_numbers<[1], [0], [0], [1], [0, 0, 1, 1], [], []>} : vector<8x32xf32>, vector<32x32xf32>, vector<8x32xf32> -> vector<8x32xf32>
    %c0_37 = arith.constant 0 : index
    %c0_38 = arith.constant 0 : index
    %c0_39 = arith.constant 0 : index
    %56 = vector.load %arg12[%c0_37, %c0_38, %c0_39] : memref<2x1x32xf32, #tpu.memory_space<vmem>>, vector<1x1x32xf32>
    %57 = vector.shape_cast %56 : vector<1x1x32xf32> to vector<1x32xf32>
    %58 = vector.broadcast %57 : vector<1x32xf32> to vector<8x32xf32>
    %59 = arith.addf %55, %58 : vector<8x32xf32>
    %cst_40 = arith.constant dense<0.000000e+00> : vector<8x32xf32>
    %60 = tpu.matmul %34, %47, %cst_40 {dimension_numbers = #tpu.dot_dimension_numbers<[1], [0], [0], [1], [0, 0, 1, 1], [], []>} : vector<8x32xf32>, vector<32x32xf32>, vector<8x32xf32> -> vector<8x32xf32>
    %c0_41 = arith.constant 0 : index
    %c0_42 = arith.constant 0 : index
    %c0_43 = arith.constant 0 : index
    %61 = vector.load %arg13[%c0_41, %c0_42, %c0_43] : memref<2x1x32xf32, #tpu.memory_space<vmem>>, vector<1x1x32xf32>
    %62 = vector.shape_cast %61 : vector<1x1x32xf32> to vector<1x32xf32>
    %63 = vector.broadcast %62 : vector<1x32xf32> to vector<8x32xf32>
    %64 = arith.addf %60, %63 : vector<8x32xf32>
    %cst_44 = arith.constant 0.000000e+00 : f32
    %65 = vector.broadcast %cst_44 : f32 to vector<8x32xf32>
    %66 = vector.extract_strided_slice %54 {offsets = [0, 0], sizes = [8, 16], strides = [1, 1]} : vector<8x32xf32> to vector<8x16xf32>
    %67 = vector.extract_strided_slice %59 {offsets = [0, 0], sizes = [8, 16], strides = [1, 1]} : vector<8x32xf32> to vector<8x16xf32>
    %68 = vector.extract_strided_slice %64 {offsets = [0, 0], sizes = [8, 16], strides = [1, 1]} : vector<8x32xf32> to vector<8x16xf32>
    "tpu.trace_start"() <{level = 10 : i32, message = "qd,kd->qk"}> : () -> ()
    %cst_45 = arith.constant dense<0.000000e+00> : vector<8x8xf32>
    %69 = tpu.matmul %66, %67, %cst_45 {dimension_numbers = #tpu.dot_dimension_numbers<[1], [1], [0], [0], [0, 0, 1, 0], [], []>} : vector<8x16xf32>, vector<8x16xf32>, vector<8x8xf32> -> vector<8x8xf32>
    "tpu.trace_stop"() : () -> ()
    %cst_46 = arith.constant 2.500000e-01 : f32
    %70 = vector.broadcast %cst_46 : f32 to vector<8x8xf32>
    %71 = arith.mulf %69, %70 : vector<8x8xf32>
    %72 = vector.broadcast %41 : vector<1x8xf32> to vector<8x8xf32>
    %73 = arith.addf %71, %72 : vector<8x8xf32>
    %cst_47 = arith.constant dense<0xFF800000> : vector<8xf32>
    %74 = vector.multi_reduction <maximumf>, %73, %cst_47 [1] : vector<8x8xf32> to vector<8xf32>
    %75 = vector.shape_cast %74 : vector<8xf32> to vector<8x1xf32>
    %76 = vector.broadcast %75 : vector<8x1xf32> to vector<8x8xf32>
    %77 = arith.subf %73, %76 : vector<8x8xf32>
    %78 = math.exp %77 : vector<8x8xf32>
    %cst_48 = arith.constant dense<0.000000e+00> : vector<8xf32>
    %79 = vector.multi_reduction <add>, %78, %cst_48 [1] : vector<8x8xf32> to vector<8xf32>
    %80 = vector.shape_cast %79 : vector<8xf32> to vector<8x1xf32>
    %81 = tpu.reciprocal %80 {approx = true} : vector<8x1xf32> -> vector<8x1xf32>
    %82 = vector.broadcast %81 : vector<8x1xf32> to vector<8x8xf32>
    %83 = arith.mulf %78, %82 : vector<8x8xf32>
    "tpu.trace_start"() <{level = 10 : i32, message = "qk,kd->qd"}> : () -> ()
    %cst_49 = arith.constant dense<0.000000e+00> : vector<8x16xf32>
    %84 = tpu.matmul %83, %68, %cst_49 {dimension_numbers = #tpu.dot_dimension_numbers<[1], [0], [0], [1], [0, 0, 1, 1], [], []>} : vector<8x8xf32>, vector<8x16xf32>, vector<8x16xf32> -> vector<8x16xf32>
    "tpu.trace_stop"() : () -> ()
    %85 = vector.extract_strided_slice %49 {offsets = [0, 0], sizes = [16, 32], strides = [1, 1]} : vector<32x32xf32> to vector<16x32xf32>
    %cst_50 = arith.constant dense<0.000000e+00> : vector<8x32xf32>
    %86 = tpu.matmul %84, %85, %cst_50 {dimension_numbers = #tpu.dot_dimension_numbers<[1], [0], [0], [1], [0, 0, 1, 1], [], []>} : vector<8x16xf32>, vector<16x32xf32>, vector<8x32xf32> -> vector<8x32xf32>
    %87 = arith.addf %65, %86 : vector<8x32xf32>
    %88 = vector.extract_strided_slice %54 {offsets = [0, 16], sizes = [8, 16], strides = [1, 1]} : vector<8x32xf32> to vector<8x16xf32>
    %89 = vector.extract_strided_slice %59 {offsets = [0, 16], sizes = [8, 16], strides = [1, 1]} : vector<8x32xf32> to vector<8x16xf32>
    %90 = vector.extract_strided_slice %64 {offsets = [0, 16], sizes = [8, 16], strides = [1, 1]} : vector<8x32xf32> to vector<8x16xf32>
    "tpu.trace_start"() <{level = 10 : i32, message = "qd,kd->qk"}> : () -> ()
    %cst_51 = arith.constant dense<0.000000e+00> : vector<8x8xf32>
    %91 = tpu.matmul %88, %89, %cst_51 {dimension_numbers = #tpu.dot_dimension_numbers<[1], [1], [0], [0], [0, 0, 1, 0], [], []>} : vector<8x16xf32>, vector<8x16xf32>, vector<8x8xf32> -> vector<8x8xf32>
    "tpu.trace_stop"() : () -> ()
    %cst_52 = arith.constant 2.500000e-01 : f32
    %92 = vector.broadcast %cst_52 : f32 to vector<8x8xf32>
    %93 = arith.mulf %91, %92 : vector<8x8xf32>
    %94 = vector.broadcast %41 : vector<1x8xf32> to vector<8x8xf32>
    %95 = arith.addf %93, %94 : vector<8x8xf32>
    %cst_53 = arith.constant dense<0xFF800000> : vector<8xf32>
    %96 = vector.multi_reduction <maximumf>, %95, %cst_53 [1] : vector<8x8xf32> to vector<8xf32>
    %97 = vector.shape_cast %96 : vector<8xf32> to vector<8x1xf32>
    %98 = vector.broadcast %97 : vector<8x1xf32> to vector<8x8xf32>
    %99 = arith.subf %95, %98 : vector<8x8xf32>
    %100 = math.exp %99 : vector<8x8xf32>
    %cst_54 = arith.constant dense<0.000000e+00> : vector<8xf32>
    %101 = vector.multi_reduction <add>, %100, %cst_54 [1] : vector<8x8xf32> to vector<8xf32>
    %102 = vector.shape_cast %101 : vector<8xf32> to vector<8x1xf32>
    %103 = tpu.reciprocal %102 {approx = true} : vector<8x1xf32> -> vector<8x1xf32>
    %104 = vector.broadcast %103 : vector<8x1xf32> to vector<8x8xf32>
    %105 = arith.mulf %100, %104 : vector<8x8xf32>
    "tpu.trace_start"() <{level = 10 : i32, message = "qk,kd->qd"}> : () -> ()
    %cst_55 = arith.constant dense<0.000000e+00> : vector<8x16xf32>
    %106 = tpu.matmul %105, %90, %cst_55 {dimension_numbers = #tpu.dot_dimension_numbers<[1], [0], [0], [1], [0, 0, 1, 1], [], []>} : vector<8x8xf32>, vector<8x16xf32>, vector<8x16xf32> -> vector<8x16xf32>
    "tpu.trace_stop"() : () -> ()
    %107 = vector.extract_strided_slice %49 {offsets = [16, 0], sizes = [16, 32], strides = [1, 1]} : vector<32x32xf32> to vector<16x32xf32>
    %cst_56 = arith.constant dense<0.000000e+00> : vector<8x32xf32>
    %108 = tpu.matmul %106, %107, %cst_56 {dimension_numbers = #tpu.dot_dimension_numbers<[1], [0], [0], [1], [0, 0, 1, 1], [], []>} : vector<8x16xf32>, vector<16x32xf32>, vector<8x32xf32> -> vector<8x32xf32>
    %109 = arith.addf %87, %108 : vector<8x32xf32>
    %c0_57 = arith.constant 0 : index
    %c0_58 = arith.constant 0 : index
    %c0_59 = arith.constant 0 : index
    %110 = vector.load %arg14[%c0_57, %c0_58, %c0_59] : memref<2x1x32xf32, #tpu.memory_space<vmem>>, vector<1x1x32xf32>
    %111 = vector.shape_cast %110 : vector<1x1x32xf32> to vector<1x32xf32>
    %112 = vector.broadcast %111 : vector<1x32xf32> to vector<8x32xf32>
    %113 = arith.addf %109, %112 : vector<8x32xf32>
    %114 = arith.addf %34, %113 : vector<8x32xf32>
    %c0_60 = arith.constant 0 : index
    %c0_61 = arith.constant 0 : index
    %c0_62 = arith.constant 0 : index
    %115 = vector.load %arg15[%c0_60, %c0_61, %c0_62] : memref<2x1x32xf32, #tpu.memory_space<vmem>>, vector<1x1x32xf32>
    %116 = vector.shape_cast %115 : vector<1x1x32xf32> to vector<1x32xf32>
    %c0_63 = arith.constant 0 : index
    %c0_64 = arith.constant 0 : index
    %c0_65 = arith.constant 0 : index
    %117 = vector.load %arg16[%c0_63, %c0_64, %c0_65] : memref<2x1x32xf32, #tpu.memory_space<vmem>>, vector<1x1x32xf32>
    %118 = vector.shape_cast %117 : vector<1x1x32xf32> to vector<1x32xf32>
    %cst_66 = arith.constant dense<0.000000e+00> : vector<8xf32>
    %119 = vector.multi_reduction <add>, %114, %cst_66 [1] : vector<8x32xf32> to vector<8xf32>
    %120 = vector.shape_cast %119 : vector<8xf32> to vector<8x1xf32>
    %cst_67 = arith.constant 3.200000e+01 : f32
    %121 = vector.broadcast %cst_67 : f32 to vector<8x1xf32>
    %122 = arith.divf %120, %121 : vector<8x1xf32>
    %123 = vector.broadcast %122 : vector<8x1xf32> to vector<8x32xf32>
    %124 = arith.subf %114, %123 : vector<8x32xf32>
    %125 = arith.mulf %124, %124 : vector<8x32xf32>
    %cst_68 = arith.constant dense<0.000000e+00> : vector<8xf32>
    %126 = vector.multi_reduction <add>, %125, %cst_68 [1] : vector<8x32xf32> to vector<8xf32>
    %127 = vector.shape_cast %126 : vector<8xf32> to vector<8x1xf32>
    %cst_69 = arith.constant 3.200000e+01 : f32
    %128 = vector.broadcast %cst_69 : f32 to vector<8x1xf32>
    %129 = arith.divf %127, %128 : vector<8x1xf32>
    %130 = vector.broadcast %122 : vector<8x1xf32> to vector<8x32xf32>
    %131 = arith.subf %114, %130 : vector<8x32xf32>
    %cst_70 = arith.constant 9.99999996E-13 : f32
    %132 = vector.broadcast %cst_70 : f32 to vector<8x1xf32>
    %133 = arith.addf %129, %132 : vector<8x1xf32>
    %134 = math.rsqrt %133 : vector<8x1xf32>
    %135 = vector.broadcast %134 : vector<8x1xf32> to vector<8x32xf32>
    %136 = arith.mulf %131, %135 : vector<8x32xf32>
    %137 = vector.broadcast %116 : vector<1x32xf32> to vector<8x32xf32>
    %138 = arith.mulf %136, %137 : vector<8x32xf32>
    %139 = vector.broadcast %118 : vector<1x32xf32> to vector<8x32xf32>
    %140 = arith.addf %138, %139 : vector<8x32xf32>
    %c0_71 = arith.constant 0 : index
    %c0_72 = arith.constant 0 : index
    %c0_73 = arith.constant 0 : index
    %141 = vector.load %arg17[%c0_71, %c0_72, %c0_73] : memref<2x32x64xf32, #tpu.memory_space<vmem>>, vector<1x32x64xf32>
    %142 = vector.shape_cast %141 : vector<1x32x64xf32> to vector<32x64xf32>
    %cst_74 = arith.constant dense<0.000000e+00> : vector<8x64xf32>
    %143 = tpu.matmul %140, %142, %cst_74 {dimension_numbers = #tpu.dot_dimension_numbers<[1], [0], [0], [1], [0, 0, 1, 1], [], []>} : vector<8x32xf32>, vector<32x64xf32>, vector<8x64xf32> -> vector<8x64xf32>
    %c0_75 = arith.constant 0 : index
    %c0_76 = arith.constant 0 : index
    %c0_77 = arith.constant 0 : index
    %144 = vector.load %arg18[%c0_75, %c0_76, %c0_77] : memref<2x1x64xf32, #tpu.memory_space<vmem>>, vector<1x1x64xf32>
    %145 = vector.shape_cast %144 : vector<1x1x64xf32> to vector<1x64xf32>
    %146 = vector.broadcast %145 : vector<1x64xf32> to vector<8x64xf32>
    %147 = arith.addf %143, %146 : vector<8x64xf32>
    %cst_78 = arith.constant 5.000000e-01 : f32
    %148 = vector.broadcast %cst_78 : f32 to vector<8x64xf32>
    %149 = arith.mulf %148, %147 : vector<8x64xf32>
    %cst_79 = arith.constant 4.471500e-02 : f32
    %150 = vector.broadcast %cst_79 : f32 to vector<8x64xf32>
    %151 = arith.mulf %150, %147 : vector<8x64xf32>
    %152 = arith.mulf %151, %147 : vector<8x64xf32>
    %153 = arith.mulf %152, %147 : vector<8x64xf32>
    %154 = arith.addf %147, %153 : vector<8x64xf32>
    %cst_80 = arith.constant 0.797884583 : f32
    %155 = vector.broadcast %cst_80 : f32 to vector<8x64xf32>
    %156 = arith.mulf %155, %154 : vector<8x64xf32>
    %157 = math.tanh %156 : vector<8x64xf32>
    %cst_81 = arith.constant 1.000000e+00 : f32
    %158 = vector.broadcast %cst_81 : f32 to vector<8x64xf32>
    %159 = arith.addf %158, %157 : vector<8x64xf32>
    %160 = arith.mulf %149, %159 : vector<8x64xf32>
    %c0_82 = arith.constant 0 : index
    %c0_83 = arith.constant 0 : index
    %c0_84 = arith.constant 0 : index
    %161 = vector.load %arg19[%c0_82, %c0_83, %c0_84] : memref<2x64x32xf32, #tpu.memory_space<vmem>>, vector<1x64x32xf32>
    %162 = vector.shape_cast %161 : vector<1x64x32xf32> to vector<64x32xf32>
    %cst_85 = arith.constant dense<0.000000e+00> : vector<8x32xf32>
    %163 = tpu.matmul %160, %162, %cst_85 {dimension_numbers = #tpu.dot_dimension_numbers<[1], [0], [0], [1], [0, 0, 1, 1], [], []>} : vector<8x64xf32>, vector<64x32xf32>, vector<8x32xf32> -> vector<8x32xf32>
    %c0_86 = arith.constant 0 : index
    %c0_87 = arith.constant 0 : index
    %c0_88 = arith.constant 0 : index
    %164 = vector.load %arg20[%c0_86, %c0_87, %c0_88] : memref<2x1x32xf32, #tpu.memory_space<vmem>>, vector<1x1x32xf32>
    %165 = vector.shape_cast %164 : vector<1x1x32xf32> to vector<1x32xf32>
    %166 = vector.broadcast %165 : vector<1x32xf32> to vector<8x32xf32>
    %167 = arith.addf %163, %166 : vector<8x32xf32>
    %168 = arith.addf %140, %167 : vector<8x32xf32>
    %c0_89 = arith.constant 0 : index
    %c0_90 = arith.constant 0 : index
    %c0_91 = arith.constant 0 : index
    %169 = vector.load %arg21[%c0_89, %c0_90, %c0_91] : memref<2x1x32xf32, #tpu.memory_space<vmem>>, vector<1x1x32xf32>
    %170 = vector.shape_cast %169 : vector<1x1x32xf32> to vector<1x32xf32>
    %c0_92 = arith.constant 0 : index
    %c0_93 = arith.constant 0 : index
    %c0_94 = arith.constant 0 : index
    %171 = vector.load %arg22[%c0_92, %c0_93, %c0_94] : memref<2x1x32xf32, #tpu.memory_space<vmem>>, vector<1x1x32xf32>
    %172 = vector.shape_cast %171 : vector<1x1x32xf32> to vector<1x32xf32>
    %cst_95 = arith.constant dense<0.000000e+00> : vector<8xf32>
    %173 = vector.multi_reduction <add>, %168, %cst_95 [1] : vector<8x32xf32> to vector<8xf32>
    %174 = vector.shape_cast %173 : vector<8xf32> to vector<8x1xf32>
    %cst_96 = arith.constant 3.200000e+01 : f32
    %175 = vector.broadcast %cst_96 : f32 to vector<8x1xf32>
    %176 = arith.divf %174, %175 : vector<8x1xf32>
    %177 = vector.broadcast %176 : vector<8x1xf32> to vector<8x32xf32>
    %178 = arith.subf %168, %177 : vector<8x32xf32>
    %179 = arith.mulf %178, %178 : vector<8x32xf32>
    %cst_97 = arith.constant dense<0.000000e+00> : vector<8xf32>
    %180 = vector.multi_reduction <add>, %179, %cst_97 [1] : vector<8x32xf32> to vector<8xf32>
    %181 = vector.shape_cast %180 : vector<8xf32> to vector<8x1xf32>
    %cst_98 = arith.constant 3.200000e+01 : f32
    %182 = vector.broadcast %cst_98 : f32 to vector<8x1xf32>
    %183 = arith.divf %181, %182 : vector<8x1xf32>
    %184 = vector.broadcast %176 : vector<8x1xf32> to vector<8x32xf32>
    %185 = arith.subf %168, %184 : vector<8x32xf32>
    %cst_99 = arith.constant 9.99999996E-13 : f32
    %186 = vector.broadcast %cst_99 : f32 to vector<8x1xf32>
    %187 = arith.addf %183, %186 : vector<8x1xf32>
    %188 = math.rsqrt %187 : vector<8x1xf32>
    %189 = vector.broadcast %188 : vector<8x1xf32> to vector<8x32xf32>
    %190 = arith.mulf %185, %189 : vector<8x32xf32>
    %191 = vector.broadcast %170 : vector<1x32xf32> to vector<8x32xf32>
    %192 = arith.mulf %190, %191 : vector<8x32xf32>
    %193 = vector.broadcast %172 : vector<1x32xf32> to vector<8x32xf32>
    %194 = arith.addf %192, %193 : vector<8x32xf32>
    %c1 = arith.constant 1 : index
    %c0_100 = arith.constant 0 : index
    %c0_101 = arith.constant 0 : index
    %195 = vector.load %arg7[%c1, %c0_100, %c0_101] : memref<2x32x32xf32, #tpu.memory_space<vmem>>, vector<1x32x32xf32>
    %196 = vector.shape_cast %195 : vector<1x32x32xf32> to vector<32x32xf32>
    %c1_102 = arith.constant 1 : index
    %c0_103 = arith.constant 0 : index
    %c0_104 = arith.constant 0 : index
    %197 = vector.load %arg8[%c1_102, %c0_103, %c0_104] : memref<2x32x32xf32, #tpu.memory_space<vmem>>, vector<1x32x32xf32>
    %198 = vector.shape_cast %197 : vector<1x32x32xf32> to vector<32x32xf32>
    %c1_105 = arith.constant 1 : index
    %c0_106 = arith.constant 0 : index
    %c0_107 = arith.constant 0 : index
    %199 = vector.load %arg9[%c1_105, %c0_106, %c0_107] : memref<2x32x32xf32, #tpu.memory_space<vmem>>, vector<1x32x32xf32>
    %200 = vector.shape_cast %199 : vector<1x32x32xf32> to vector<32x32xf32>
    %c1_108 = arith.constant 1 : index
    %c0_109 = arith.constant 0 : index
    %c0_110 = arith.constant 0 : index
    %201 = vector.load %arg10[%c1_108, %c0_109, %c0_110] : memref<2x32x32xf32, #tpu.memory_space<vmem>>, vector<1x32x32xf32>
    %202 = vector.shape_cast %201 : vector<1x32x32xf32> to vector<32x32xf32>
    %cst_111 = arith.constant dense<0.000000e+00> : vector<8x32xf32>
    %203 = tpu.matmul %194, %196, %cst_111 {dimension_numbers = #tpu.dot_dimension_numbers<[1], [0], [0], [1], [0, 0, 1, 1], [], []>} : vector<8x32xf32>, vector<32x32xf32>, vector<8x32xf32> -> vector<8x32xf32>
    %c1_112 = arith.constant 1 : index
    %c0_113 = arith.constant 0 : index
    %c0_114 = arith.constant 0 : index
    %204 = vector.load %arg11[%c1_112, %c0_113, %c0_114] : memref<2x1x32xf32, #tpu.memory_space<vmem>>, vector<1x1x32xf32>
    %205 = vector.shape_cast %204 : vector<1x1x32xf32> to vector<1x32xf32>
    %206 = vector.broadcast %205 : vector<1x32xf32> to vector<8x32xf32>
    %207 = arith.addf %203, %206 : vector<8x32xf32>
    %cst_115 = arith.constant dense<0.000000e+00> : vector<8x32xf32>
    %208 = tpu.matmul %194, %198, %cst_115 {dimension_numbers = #tpu.dot_dimension_numbers<[1], [0], [0], [1], [0, 0, 1, 1], [], []>} : vector<8x32xf32>, vector<32x32xf32>, vector<8x32xf32> -> vector<8x32xf32>
    %c1_116 = arith.constant 1 : index
    %c0_117 = arith.constant 0 : index
    %c0_118 = arith.constant 0 : index
    %209 = vector.load %arg12[%c1_116, %c0_117, %c0_118] : memref<2x1x32xf32, #tpu.memory_space<vmem>>, vector<1x1x32xf32>
    %210 = vector.shape_cast %209 : vector<1x1x32xf32> to vector<1x32xf32>
    %211 = vector.broadcast %210 : vector<1x32xf32> to vector<8x32xf32>
    %212 = arith.addf %208, %211 : vector<8x32xf32>
    %cst_119 = arith.constant dense<0.000000e+00> : vector<8x32xf32>
    %213 = tpu.matmul %194, %200, %cst_119 {dimension_numbers = #tpu.dot_dimension_numbers<[1], [0], [0], [1], [0, 0, 1, 1], [], []>} : vector<8x32xf32>, vector<32x32xf32>, vector<8x32xf32> -> vector<8x32xf32>
    %c1_120 = arith.constant 1 : index
    %c0_121 = arith.constant 0 : index
    %c0_122 = arith.constant 0 : index
    %214 = vector.load %arg13[%c1_120, %c0_121, %c0_122] : memref<2x1x32xf32, #tpu.memory_space<vmem>>, vector<1x1x32xf32>
    %215 = vector.shape_cast %214 : vector<1x1x32xf32> to vector<1x32xf32>
    %216 = vector.broadcast %215 : vector<1x32xf32> to vector<8x32xf32>
    %217 = arith.addf %213, %216 : vector<8x32xf32>
    %cst_123 = arith.constant 0.000000e+00 : f32
    %218 = vector.broadcast %cst_123 : f32 to vector<8x32xf32>
    %219 = vector.extract_strided_slice %207 {offsets = [0, 0], sizes = [8, 16], strides = [1, 1]} : vector<8x32xf32> to vector<8x16xf32>
    %220 = vector.extract_strided_slice %212 {offsets = [0, 0], sizes = [8, 16], strides = [1, 1]} : vector<8x32xf32> to vector<8x16xf32>
    %221 = vector.extract_strided_slice %217 {offsets = [0, 0], sizes = [8, 16], strides = [1, 1]} : vector<8x32xf32> to vector<8x16xf32>
    "tpu.trace_start"() <{level = 10 : i32, message = "qd,kd->qk"}> : () -> ()
    %cst_124 = arith.constant dense<0.000000e+00> : vector<8x8xf32>
    %222 = tpu.matmul %219, %220, %cst_124 {dimension_numbers = #tpu.dot_dimension_numbers<[1], [1], [0], [0], [0, 0, 1, 0], [], []>} : vector<8x16xf32>, vector<8x16xf32>, vector<8x8xf32> -> vector<8x8xf32>
    "tpu.trace_stop"() : () -> ()
    %cst_125 = arith.constant 2.500000e-01 : f32
    %223 = vector.broadcast %cst_125 : f32 to vector<8x8xf32>
    %224 = arith.mulf %222, %223 : vector<8x8xf32>
    %225 = vector.broadcast %41 : vector<1x8xf32> to vector<8x8xf32>
    %226 = arith.addf %224, %225 : vector<8x8xf32>
    %cst_126 = arith.constant dense<0xFF800000> : vector<8xf32>
    %227 = vector.multi_reduction <maximumf>, %226, %cst_126 [1] : vector<8x8xf32> to vector<8xf32>
    %228 = vector.shape_cast %227 : vector<8xf32> to vector<8x1xf32>
    %229 = vector.broadcast %228 : vector<8x1xf32> to vector<8x8xf32>
    %230 = arith.subf %226, %229 : vector<8x8xf32>
    %231 = math.exp %230 : vector<8x8xf32>
    %cst_127 = arith.constant dense<0.000000e+00> : vector<8xf32>
    %232 = vector.multi_reduction <add>, %231, %cst_127 [1] : vector<8x8xf32> to vector<8xf32>
    %233 = vector.shape_cast %232 : vector<8xf32> to vector<8x1xf32>
    %234 = tpu.reciprocal %233 {approx = true} : vector<8x1xf32> -> vector<8x1xf32>
    %235 = vector.broadcast %234 : vector<8x1xf32> to vector<8x8xf32>
    %236 = arith.mulf %231, %235 : vector<8x8xf32>
    "tpu.trace_start"() <{level = 10 : i32, message = "qk,kd->qd"}> : () -> ()
    %cst_128 = arith.constant dense<0.000000e+00> : vector<8x16xf32>
    %237 = tpu.matmul %236, %221, %cst_128 {dimension_numbers = #tpu.dot_dimension_numbers<[1], [0], [0], [1], [0, 0, 1, 1], [], []>} : vector<8x8xf32>, vector<8x16xf32>, vector<8x16xf32> -> vector<8x16xf32>
    "tpu.trace_stop"() : () -> ()
    %238 = vector.extract_strided_slice %202 {offsets = [0, 0], sizes = [16, 32], strides = [1, 1]} : vector<32x32xf32> to vector<16x32xf32>
    %cst_129 = arith.constant dense<0.000000e+00> : vector<8x32xf32>
    %239 = tpu.matmul %237, %238, %cst_129 {dimension_numbers = #tpu.dot_dimension_numbers<[1], [0], [0], [1], [0, 0, 1, 1], [], []>} : vector<8x16xf32>, vector<16x32xf32>, vector<8x32xf32> -> vector<8x32xf32>
    %240 = arith.addf %218, %239 : vector<8x32xf32>
    %241 = vector.extract_strided_slice %207 {offsets = [0, 16], sizes = [8, 16], strides = [1, 1]} : vector<8x32xf32> to vector<8x16xf32>
    %242 = vector.extract_strided_slice %212 {offsets = [0, 16], sizes = [8, 16], strides = [1, 1]} : vector<8x32xf32> to vector<8x16xf32>
    %243 = vector.extract_strided_slice %217 {offsets = [0, 16], sizes = [8, 16], strides = [1, 1]} : vector<8x32xf32> to vector<8x16xf32>
    "tpu.trace_start"() <{level = 10 : i32, message = "qd,kd->qk"}> : () -> ()
    %cst_130 = arith.constant dense<0.000000e+00> : vector<8x8xf32>
    %244 = tpu.matmul %241, %242, %cst_130 {dimension_numbers = #tpu.dot_dimension_numbers<[1], [1], [0], [0], [0, 0, 1, 0], [], []>} : vector<8x16xf32>, vector<8x16xf32>, vector<8x8xf32> -> vector<8x8xf32>
    "tpu.trace_stop"() : () -> ()
    %cst_131 = arith.constant 2.500000e-01 : f32
    %245 = vector.broadcast %cst_131 : f32 to vector<8x8xf32>
    %246 = arith.mulf %244, %245 : vector<8x8xf32>
    %247 = vector.broadcast %41 : vector<1x8xf32> to vector<8x8xf32>
    %248 = arith.addf %246, %247 : vector<8x8xf32>
    %cst_132 = arith.constant dense<0xFF800000> : vector<8xf32>
    %249 = vector.multi_reduction <maximumf>, %248, %cst_132 [1] : vector<8x8xf32> to vector<8xf32>
    %250 = vector.shape_cast %249 : vector<8xf32> to vector<8x1xf32>
    %251 = vector.broadcast %250 : vector<8x1xf32> to vector<8x8xf32>
    %252 = arith.subf %248, %251 : vector<8x8xf32>
    %253 = math.exp %252 : vector<8x8xf32>
    %cst_133 = arith.constant dense<0.000000e+00> : vector<8xf32>
    %254 = vector.multi_reduction <add>, %253, %cst_133 [1] : vector<8x8xf32> to vector<8xf32>
    %255 = vector.shape_cast %254 : vector<8xf32> to vector<8x1xf32>
    %256 = tpu.reciprocal %255 {approx = true} : vector<8x1xf32> -> vector<8x1xf32>
    %257 = vector.broadcast %256 : vector<8x1xf32> to vector<8x8xf32>
    %258 = arith.mulf %253, %257 : vector<8x8xf32>
    "tpu.trace_start"() <{level = 10 : i32, message = "qk,kd->qd"}> : () -> ()
    %cst_134 = arith.constant dense<0.000000e+00> : vector<8x16xf32>
    %259 = tpu.matmul %258, %243, %cst_134 {dimension_numbers = #tpu.dot_dimension_numbers<[1], [0], [0], [1], [0, 0, 1, 1], [], []>} : vector<8x8xf32>, vector<8x16xf32>, vector<8x16xf32> -> vector<8x16xf32>
    "tpu.trace_stop"() : () -> ()
    %260 = vector.extract_strided_slice %202 {offsets = [16, 0], sizes = [16, 32], strides = [1, 1]} : vector<32x32xf32> to vector<16x32xf32>
    %cst_135 = arith.constant dense<0.000000e+00> : vector<8x32xf32>
    %261 = tpu.matmul %259, %260, %cst_135 {dimension_numbers = #tpu.dot_dimension_numbers<[1], [0], [0], [1], [0, 0, 1, 1], [], []>} : vector<8x16xf32>, vector<16x32xf32>, vector<8x32xf32> -> vector<8x32xf32>
    %262 = arith.addf %240, %261 : vector<8x32xf32>
    %c1_136 = arith.constant 1 : index
    %c0_137 = arith.constant 0 : index
    %c0_138 = arith.constant 0 : index
    %263 = vector.load %arg14[%c1_136, %c0_137, %c0_138] : memref<2x1x32xf32, #tpu.memory_space<vmem>>, vector<1x1x32xf32>
    %264 = vector.shape_cast %263 : vector<1x1x32xf32> to vector<1x32xf32>
    %265 = vector.broadcast %264 : vector<1x32xf32> to vector<8x32xf32>
    %266 = arith.addf %262, %265 : vector<8x32xf32>
    %267 = arith.addf %194, %266 : vector<8x32xf32>
    %c1_139 = arith.constant 1 : index
    %c0_140 = arith.constant 0 : index
    %c0_141 = arith.constant 0 : index
    %268 = vector.load %arg15[%c1_139, %c0_140, %c0_141] : memref<2x1x32xf32, #tpu.memory_space<vmem>>, vector<1x1x32xf32>
    %269 = vector.shape_cast %268 : vector<1x1x32xf32> to vector<1x32xf32>
    %c1_142 = arith.constant 1 : index
    %c0_143 = arith.constant 0 : index
    %c0_144 = arith.constant 0 : index
    %270 = vector.load %arg16[%c1_142, %c0_143, %c0_144] : memref<2x1x32xf32, #tpu.memory_space<vmem>>, vector<1x1x32xf32>
    %271 = vector.shape_cast %270 : vector<1x1x32xf32> to vector<1x32xf32>
    %cst_145 = arith.constant dense<0.000000e+00> : vector<8xf32>
    %272 = vector.multi_reduction <add>, %267, %cst_145 [1] : vector<8x32xf32> to vector<8xf32>
    %273 = vector.shape_cast %272 : vector<8xf32> to vector<8x1xf32>
    %cst_146 = arith.constant 3.200000e+01 : f32
    %274 = vector.broadcast %cst_146 : f32 to vector<8x1xf32>
    %275 = arith.divf %273, %274 : vector<8x1xf32>
    %276 = vector.broadcast %275 : vector<8x1xf32> to vector<8x32xf32>
    %277 = arith.subf %267, %276 : vector<8x32xf32>
    %278 = arith.mulf %277, %277 : vector<8x32xf32>
    %cst_147 = arith.constant dense<0.000000e+00> : vector<8xf32>
    %279 = vector.multi_reduction <add>, %278, %cst_147 [1] : vector<8x32xf32> to vector<8xf32>
    %280 = vector.shape_cast %279 : vector<8xf32> to vector<8x1xf32>
    %cst_148 = arith.constant 3.200000e+01 : f32
    %281 = vector.broadcast %cst_148 : f32 to vector<8x1xf32>
    %282 = arith.divf %280, %281 : vector<8x1xf32>
    %283 = vector.broadcast %275 : vector<8x1xf32> to vector<8x32xf32>
    %284 = arith.subf %267, %283 : vector<8x32xf32>
    %cst_149 = arith.constant 9.99999996E-13 : f32
    %285 = vector.broadcast %cst_149 : f32 to vector<8x1xf32>
    %286 = arith.addf %282, %285 : vector<8x1xf32>
    %287 = math.rsqrt %286 : vector<8x1xf32>
    %288 = vector.broadcast %287 : vector<8x1xf32> to vector<8x32xf32>
    %289 = arith.mulf %284, %288 : vector<8x32xf32>
    %290 = vector.broadcast %269 : vector<1x32xf32> to vector<8x32xf32>
    %291 = arith.mulf %289, %290 : vector<8x32xf32>
    %292 = vector.broadcast %271 : vector<1x32xf32> to vector<8x32xf32>
    %293 = arith.addf %291, %292 : vector<8x32xf32>
    %c1_150 = arith.constant 1 : index
    %c0_151 = arith.constant 0 : index
    %c0_152 = arith.constant 0 : index
    %294 = vector.load %arg17[%c1_150, %c0_151, %c0_152] : memref<2x32x64xf32, #tpu.memory_space<vmem>>, vector<1x32x64xf32>
    %295 = vector.shape_cast %294 : vector<1x32x64xf32> to vector<32x64xf32>
    %cst_153 = arith.constant dense<0.000000e+00> : vector<8x64xf32>
    %296 = tpu.matmul %293, %295, %cst_153 {dimension_numbers = #tpu.dot_dimension_numbers<[1], [0], [0], [1], [0, 0, 1, 1], [], []>} : vector<8x32xf32>, vector<32x64xf32>, vector<8x64xf32> -> vector<8x64xf32>
    %c1_154 = arith.constant 1 : index
    %c0_155 = arith.constant 0 : index
    %c0_156 = arith.constant 0 : index
    %297 = vector.load %arg18[%c1_154, %c0_155, %c0_156] : memref<2x1x64xf32, #tpu.memory_space<vmem>>, vector<1x1x64xf32>
    %298 = vector.shape_cast %297 : vector<1x1x64xf32> to vector<1x64xf32>
    %299 = vector.broadcast %298 : vector<1x64xf32> to vector<8x64xf32>
    %300 = arith.addf %296, %299 : vector<8x64xf32>
    %cst_157 = arith.constant 5.000000e-01 : f32
    %301 = vector.broadcast %cst_157 : f32 to vector<8x64xf32>
    %302 = arith.mulf %301, %300 : vector<8x64xf32>
    %cst_158 = arith.constant 4.471500e-02 : f32
    %303 = vector.broadcast %cst_158 : f32 to vector<8x64xf32>
    %304 = arith.mulf %303, %300 : vector<8x64xf32>
    %305 = arith.mulf %304, %300 : vector<8x64xf32>
    %306 = arith.mulf %305, %300 : vector<8x64xf32>
    %307 = arith.addf %300, %306 : vector<8x64xf32>
    %cst_159 = arith.constant 0.797884583 : f32
    %308 = vector.broadcast %cst_159 : f32 to vector<8x64xf32>
    %309 = arith.mulf %308, %307 : vector<8x64xf32>
    %310 = math.tanh %309 : vector<8x64xf32>
    %cst_160 = arith.constant 1.000000e+00 : f32
    %311 = vector.broadcast %cst_160 : f32 to vector<8x64xf32>
    %312 = arith.addf %311, %310 : vector<8x64xf32>
    %313 = arith.mulf %302, %312 : vector<8x64xf32>
    %c1_161 = arith.constant 1 : index
    %c0_162 = arith.constant 0 : index
    %c0_163 = arith.constant 0 : index
    %314 = vector.load %arg19[%c1_161, %c0_162, %c0_163] : memref<2x64x32xf32, #tpu.memory_space<vmem>>, vector<1x64x32xf32>
    %315 = vector.shape_cast %314 : vector<1x64x32xf32> to vector<64x32xf32>
    %cst_164 = arith.constant dense<0.000000e+00> : vector<8x32xf32>
    %316 = tpu.matmul %313, %315, %cst_164 {dimension_numbers = #tpu.dot_dimension_numbers<[1], [0], [0], [1], [0, 0, 1, 1], [], []>} : vector<8x64xf32>, vector<64x32xf32>, vector<8x32xf32> -> vector<8x32xf32>
    %c1_165 = arith.constant 1 : index
    %c0_166 = arith.constant 0 : index
    %c0_167 = arith.constant 0 : index
    %317 = vector.load %arg20[%c1_165, %c0_166, %c0_167] : memref<2x1x32xf32, #tpu.memory_space<vmem>>, vector<1x1x32xf32>
    %318 = vector.shape_cast %317 : vector<1x1x32xf32> to vector<1x32xf32>
    %319 = vector.broadcast %318 : vector<1x32xf32> to vector<8x32xf32>
    %320 = arith.addf %316, %319 : vector<8x32xf32>
    %321 = arith.addf %293, %320 : vector<8x32xf32>
    %c1_168 = arith.constant 1 : index
    %c0_169 = arith.constant 0 : index
    %c0_170 = arith.constant 0 : index
    %322 = vector.load %arg21[%c1_168, %c0_169, %c0_170] : memref<2x1x32xf32, #tpu.memory_space<vmem>>, vector<1x1x32xf32>
    %323 = vector.shape_cast %322 : vector<1x1x32xf32> to vector<1x32xf32>
    %c1_171 = arith.constant 1 : index
    %c0_172 = arith.constant 0 : index
    %c0_173 = arith.constant 0 : index
    %324 = vector.load %arg22[%c1_171, %c0_172, %c0_173] : memref<2x1x32xf32, #tpu.memory_space<vmem>>, vector<1x1x32xf32>
    %325 = vector.shape_cast %324 : vector<1x1x32xf32> to vector<1x32xf32>
    %cst_174 = arith.constant dense<0.000000e+00> : vector<8xf32>
    %326 = vector.multi_reduction <add>, %321, %cst_174 [1] : vector<8x32xf32> to vector<8xf32>
    %327 = vector.shape_cast %326 : vector<8xf32> to vector<8x1xf32>
    %cst_175 = arith.constant 3.200000e+01 : f32
    %328 = vector.broadcast %cst_175 : f32 to vector<8x1xf32>
    %329 = arith.divf %327, %328 : vector<8x1xf32>
    %330 = vector.broadcast %329 : vector<8x1xf32> to vector<8x32xf32>
    %331 = arith.subf %321, %330 : vector<8x32xf32>
    %332 = arith.mulf %331, %331 : vector<8x32xf32>
    %cst_176 = arith.constant dense<0.000000e+00> : vector<8xf32>
    %333 = vector.multi_reduction <add>, %332, %cst_176 [1] : vector<8x32xf32> to vector<8xf32>
    %334 = vector.shape_cast %333 : vector<8xf32> to vector<8x1xf32>
    %cst_177 = arith.constant 3.200000e+01 : f32
    %335 = vector.broadcast %cst_177 : f32 to vector<8x1xf32>
    %336 = arith.divf %334, %335 : vector<8x1xf32>
    %337 = vector.broadcast %329 : vector<8x1xf32> to vector<8x32xf32>
    %338 = arith.subf %321, %337 : vector<8x32xf32>
    %cst_178 = arith.constant 9.99999996E-13 : f32
    %339 = vector.broadcast %cst_178 : f32 to vector<8x1xf32>
    %340 = arith.addf %336, %339 : vector<8x1xf32>
    %341 = math.rsqrt %340 : vector<8x1xf32>
    %342 = vector.broadcast %341 : vector<8x1xf32> to vector<8x32xf32>
    %343 = arith.mulf %338, %342 : vector<8x32xf32>
    %344 = vector.broadcast %323 : vector<1x32xf32> to vector<8x32xf32>
    %345 = arith.mulf %343, %344 : vector<8x32xf32>
    %346 = vector.broadcast %325 : vector<1x32xf32> to vector<8x32xf32>
    %347 = arith.addf %345, %346 : vector<8x32xf32>
    %c0_179 = arith.constant 0 : index
    %c0_180 = arith.constant 0 : index
    %348 = vector.load %arg23[%c0_179, %c0_180] : memref<32x256xf32, #tpu.memory_space<vmem>>, vector<32x256xf32>
    %cst_181 = arith.constant dense<0.000000e+00> : vector<8x256xf32>
    %349 = tpu.matmul %347, %348, %cst_181 {dimension_numbers = #tpu.dot_dimension_numbers<[1], [0], [0], [1], [0, 0, 1, 1], [], []>} : vector<8x32xf32>, vector<32x256xf32>, vector<8x256xf32> -> vector<8x256xf32>
    %c0_182 = arith.constant 0 : index
    %c0_183 = arith.constant 0 : index
    %350 = vector.load %arg24[%c0_182, %c0_183] : memref<1x256xf32, #tpu.memory_space<vmem>>, vector<1x256xf32>
    %351 = vector.broadcast %350 : vector<1x256xf32> to vector<8x256xf32>
    %352 = arith.addf %349, %351 : vector<8x256xf32>
    %c0_184 = arith.constant 0 : index
    %c0_185 = arith.constant 0 : index
    %353 = vector.load %arg25[%c0_184, %c0_185] : memref<256x128xf32, #tpu.memory_space<vmem>>, vector<256x128xf32>
    %cst_186 = arith.constant dense<0.000000e+00> : vector<8x128xf32>
    %354 = tpu.matmul %352, %353, %cst_186 {dimension_numbers = #tpu.dot_dimension_numbers<[1], [0], [0], [1], [0, 0, 1, 1], [], []>} : vector<8x256xf32>, vector<256x128xf32>, vector<8x128xf32> -> vector<8x128xf32>
    %c0_187 = arith.constant 0 : index
    %c0_188 = arith.constant 0 : index
    %355 = vector.load %arg26[%c0_187, %c0_188] : memref<1x128xf32, #tpu.memory_space<vmem>>, vector<1x128xf32>
    %356 = vector.broadcast %355 : vector<1x128xf32> to vector<8x128xf32>
    %357 = arith.addf %354, %356 : vector<8x128xf32>
    %c0_189 = arith.constant 0 : index
    %c0_190 = arith.constant 0 : index
    %c0_191 = arith.constant 0 : index
    %358 = vector.load %arg27[%c0_189, %c0_190, %c0_191] : memref<1x8x128xf32, #tpu.memory_space<vmem>>, vector<1x8x128xf32>
    %359 = vector.shape_cast %358 : vector<1x8x128xf32> to vector<8x128xf32>
    %360 = vector.shape_cast %357 : vector<8x128xf32> to vector<1x8x128xf32>
    tpu.vector_store %arg27[%c0_189, %c0_190, %c0_191], %360 {strides = array<i32>} : memref<1x8x128xf32, #tpu.memory_space<vmem>>, vector<1x8x128xf32>,
    %cst_192 = arith.constant dense<0xFF800000> : vector<8xf32>
    %361 = vector.multi_reduction <maximumf>, %357, %cst_192 [1] : vector<8x128xf32> to vector<8xf32>
    %362 = vector.shape_cast %361 : vector<8xf32> to vector<8x1xf32>
    %363 = tpu.iota {dimensions = array<i32: 1>} : vector<8x128xi32>
    %364 = vector.broadcast %362 : vector<8x1xf32> to vector<8x128xf32>
    %365 = arith.cmpf oeq, %357, %364 : vector<8x128xf32>
    %c128_i32 = arith.constant 128 : i32
    %366 = vector.broadcast %c128_i32 : i32 to vector<8x128xi32>
    %367 = arith.select %365, %363, %366 : vector<8x128xi1>, vector<8x128xi32>
    %cst_193 = arith.constant dense<2147483647> : vector<8xi32>
    %368 = vector.multi_reduction <minsi>, %367, %cst_193 [1] : vector<8x128xi32> to vector<8xi32>
    %369 = vector.shape_cast %368 : vector<8xi32> to vector<8x1xi32>
    %c0_194 = arith.constant 0 : index
    %c0_195 = arith.constant 0 : index
    %c0_196 = arith.constant 0 : index
    %370 = vector.load %arg28[%c0_194, %c0_195, %c0_196] : memref<1x8x1xi32, #tpu.memory_space<vmem>>, vector<1x8x1xi32>
    %371 = vector.shape_cast %370 : vector<1x8x1xi32> to vector<8x1xi32>
    %372 = vector.shape_cast %369 : vector<8x1xi32> to vector<1x8x1xi32>
    tpu.vector_store %arg28[%c0_194, %c0_195, %c0_196], %372 {strides = array<i32>} : memref<1x8x1xi32, #tpu.memory_space<vmem>>, vector<1x8x1xi32>,
    return
  }
  func.func @transform_0(%arg0: i32) -> (i32, i32, i32) {
    %c0_i32 = arith.constant 0 : i32
    %c0_i32_0 = arith.constant 0 : i32
    %c0_i32_1 = arith.constant 0 : i32
    return %arg0, %c0_i32, %c0_i32_0 : i32, i32, i32
  }
  func.func @transform_1(%arg0: i32) -> (i32, i32, i32) {
    %c0_i32 = arith.constant 0 : i32
    %c0_i32_0 = arith.constant 0 : i32
    %c0_i32_1 = arith.constant 0 : i32
    return %arg0, %c0_i32, %c0_i32_0 : i32, i32, i32
  }
  func.func @transform_2(%arg0: i32) -> (i32, i32) {
    %c0_i32 = arith.constant 0 : i32
    %c0_i32_0 = arith.constant 0 : i32
    %c0_i32_1 = arith.constant 0 : i32
    return %c0_i32, %c0_i32_0 : i32, i32
  }
  func.func @transform_3(%arg0: i32) -> (i32, i32) {
    %c0_i32 = arith.constant 0 : i32
    %c0_i32_0 = arith.constant 0 : i32
    %c0_i32_1 = arith.constant 0 : i32
    return %c0_i32, %c0_i32_0 : i32, i32
  }
  func.func @transform_4(%arg0: i32) -> (i32, i32) {
    %c0_i32 = arith.constant 0 : i32
    %c0_i32_0 = arith.constant 0 : i32
    %c0_i32_1 = arith.constant 0 : i32
    return %c0_i32, %c0_i32_0 : i32, i32
  }
  func.func @transform_5(%arg0: i32) -> (i32, i32) {
    %c0_i32 = arith.constant 0 : i32
    %c0_i32_0 = arith.constant 0 : i32
    %c0_i32_1 = arith.constant 0 : i32
    return %c0_i32, %c0_i32_0 : i32, i32
  }
  func.func @transform_6(%arg0: i32) -> (i32, i32, i32) {
    %c0_i32 = arith.constant 0 : i32
    %c0_i32_0 = arith.constant 0 : i32
    %c0_i32_1 = arith.constant 0 : i32
    %c0_i32_2 = arith.constant 0 : i32
    return %c0_i32, %c0_i32_0, %c0_i32_1 : i32, i32, i32
  }
  func.func @transform_7(%arg0: i32) -> (i32, i32, i32) {
    %c0_i32 = arith.constant 0 : i32
    %c0_i32_0 = arith.constant 0 : i32
    %c0_i32_1 = arith.constant 0 : i32
    %c0_i32_2 = arith.constant 0 : i32
    return %c0_i32, %c0_i32_0, %c0_i32_1 : i32, i32, i32
  }
  func.func @transform_8(%arg0: i32) -> (i32, i32, i32) {
    %c0_i32 = arith.constant 0 : i32
    %c0_i32_0 = arith.constant 0 : i32
    %c0_i32_1 = arith.constant 0 : i32
    %c0_i32_2 = arith.constant 0 : i32
    return %c0_i32, %c0_i32_0, %c0_i32_1 : i32, i32, i32
  }
  func.func @transform_9(%arg0: i32) -> (i32, i32, i32) {
    %c0_i32 = arith.constant 0 : i32
    %c0_i32_0 = arith.constant 0 : i32
    %c0_i32_1 = arith.constant 0 : i32
    %c0_i32_2 = arith.constant 0 : i32
    return %c0_i32, %c0_i32_0, %c0_i32_1 : i32, i32, i32
  }
  func.func @transform_10(%arg0: i32) -> (i32, i32, i32) {
    %c0_i32 = arith.constant 0 : i32
    %c0_i32_0 = arith.constant 0 : i32
    %c0_i32_1 = arith.constant 0 : i32
    %c0_i32_2 = arith.constant 0 : i32
    return %c0_i32, %c0_i32_0, %c0_i32_1 : i32, i32, i32
  }
  func.func @transform_11(%arg0: i32) -> (i32, i32, i32) {
    %c0_i32 = arith.constant 0 : i32
    %c0_i32_0 = arith.constant 0 : i32
    %c0_i32_1 = arith.constant 0 : i32
    %c0_i32_2 = arith.constant 0 : i32
    return %c0_i32, %c0_i32_0, %c0_i32_1 : i32, i32, i32
  }
  func.func @transform_12(%arg0: i32) -> (i32, i32, i32) {
    %c0_i32 = arith.constant 0 : i32
    %c0_i32_0 = arith.constant 0 : i32
    %c0_i32_1 = arith.constant 0 : i32
    %c0_i32_2 = arith.constant 0 : i32
    return %c0_i32, %c0_i32_0, %c0_i32_1 : i32, i32, i32
  }
  func.func @transform_13(%arg0: i32) -> (i32, i32, i32) {
    %c0_i32 = arith.constant 0 : i32
    %c0_i32_0 = arith.constant 0 : i32
    %c0_i32_1 = arith.constant 0 : i32
    %c0_i32_2 = arith.constant 0 : i32
    return %c0_i32, %c0_i32_0, %c0_i32_1 : i32, i32, i32
  }
  func.func @transform_14(%arg0: i32) -> (i32, i32, i32) {
    %c0_i32 = arith.constant 0 : i32
    %c0_i32_0 = arith.constant 0 : i32
    %c0_i32_1 = arith.constant 0 : i32
    %c0_i32_2 = arith.constant 0 : i32
    return %c0_i32, %c0_i32_0, %c0_i32_1 : i32, i32, i32
  }
  func.func @transform_15(%arg0: i32) -> (i32, i32, i32) {
    %c0_i32 = arith.constant 0 : i32
    %c0_i32_0 = arith.constant 0 : i32
    %c0_i32_1 = arith.constant 0 : i32
    %c0_i32_2 = arith.constant 0 : i32
    return %c0_i32, %c0_i32_0, %c0_i32_1 : i32, i32, i32
  }
  func.func @transform_16(%arg0: i32) -> (i32, i32, i32) {
    %c0_i32 = arith.constant 0 : i32
    %c0_i32_0 = arith.constant 0 : i32
    %c0_i32_1 = arith.constant 0 : i32
    %c0_i32_2 = arith.constant 0 : i32
    return %c0_i32, %c0_i32_0, %c0_i32_1 : i32, i32, i32
  }
  func.func @transform_17(%arg0: i32) -> (i32, i32, i32) {
    %c0_i32 = arith.constant 0 : i32
    %c0_i32_0 = arith.constant 0 : i32
    %c0_i32_1 = arith.constant 0 : i32
    %c0_i32_2 = arith.constant 0 : i32
    return %c0_i32, %c0_i32_0, %c0_i32_1 : i32, i32, i32
  }
  func.func @transform_18(%arg0: i32) -> (i32, i32, i32) {
    %c0_i32 = arith.constant 0 : i32
    %c0_i32_0 = arith.constant 0 : i32
    %c0_i32_1 = arith.constant 0 : i32
    %c0_i32_2 = arith.constant 0 : i32
    return %c0_i32, %c0_i32_0, %c0_i32_1 : i32, i32, i32
  }
  func.func @transform_19(%arg0: i32) -> (i32, i32, i32) {
    %c0_i32 = arith.constant 0 : i32
    %c0_i32_0 = arith.constant 0 : i32
    %c0_i32_1 = arith.constant 0 : i32
    %c0_i32_2 = arith.constant 0 : i32
    return %c0_i32, %c0_i32_0, %c0_i32_1 : i32, i32, i32
  }
  func.func @transform_20(%arg0: i32) -> (i32, i32, i32) {
    %c0_i32 = arith.constant 0 : i32
    %c0_i32_0 = arith.constant 0 : i32
    %c0_i32_1 = arith.constant 0 : i32
    %c0_i32_2 = arith.constant 0 : i32
    return %c0_i32, %c0_i32_0, %c0_i32_1 : i32, i32, i32
  }
  func.func @transform_21(%arg0: i32) -> (i32, i32, i32) {
    %c0_i32 = arith.constant 0 : i32
    %c0_i32_0 = arith.constant 0 : i32
    %c0_i32_1 = arith.constant 0 : i32
    %c0_i32_2 = arith.constant 0 : i32
    return %c0_i32, %c0_i32_0, %c0_i32_1 : i32, i32, i32
  }
  func.func @transform_22(%arg0: i32) -> (i32, i32) {
    %c0_i32 = arith.constant 0 : i32
    %c0_i32_0 = arith.constant 0 : i32
    %c0_i32_1 = arith.constant 0 : i32
    return %c0_i32, %c0_i32_0 : i32, i32
  }
  func.func @transform_23(%arg0: i32) -> (i32, i32) {
    %c0_i32 = arith.constant 0 : i32
    %c0_i32_0 = arith.constant 0 : i32
    %c0_i32_1 = arith.constant 0 : i32
    return %c0_i32, %c0_i32_0 : i32, i32
  }
  func.func @transform_24(%arg0: i32) -> (i32, i32) {
    %c0_i32 = arith.constant 0 : i32
    %c0_i32_0 = arith.constant 0 : i32
    %c0_i32_1 = arith.constant 0 : i32
    return %c0_i32, %c0_i32_0 : i32, i32
  }
  func.func @transform_25(%arg0: i32) -> (i32, i32) {
    %c0_i32 = arith.constant 0 : i32
    %c0_i32_0 = arith.constant 0 : i32
    %c0_i32_1 = arith.constant 0 : i32
    return %c0_i32, %c0_i32_0 : i32, i32
  }
  func.func @transform_26(%arg0: i32) -> (i32, i32, i32) {
    %c0_i32 = arith.constant 0 : i32
    %c0_i32_0 = arith.constant 0 : i32
    %c0_i32_1 = arith.constant 0 : i32
    return %arg0, %c0_i32, %c0_i32_0 : i32, i32, i32
  }
  func.func @transform_27(%arg0: i32) -> (i32, i32, i32) {
    %c0_i32 = arith.constant 0 : i32
    %c0_i32_0 = arith.constant 0 : i32
    %c0_i32_1 = arith.constant 0 : i32
    return %arg0, %c0_i32, %c0_i32_0 : i32, i32, i32
  }
}

</mosaic_0001>

<bundles_post_ra>
// kernel: _forward_impl.1
= control target key start
LH: loop header
LB: loop body
LE: loop exit
PB: predicated region body
PF: predicated region fallthrough
CT: control target
= control target key end

     0   :  { %s3371_s0 = inlined_call_operand.vmem [shape: s32[2,8,1], index: 0, kind: input, shape index: {}]   ;;  %s3372_s1 = inlined_call_operand.vmem [shape: s32[2,1,8], index: 1, kind: input, shape index: {}]   ;;  %s3373_s2 = inlined_call_operand.vmem [shape: f32[100,32], index: 2, kind: input, shape index: {}]   ;;  %s3374_s3 = inlined_call_operand.vmem [shape: f32[8,32], index: 3, kind: input, shape index: {}]   ;;  %s3375_s4 = inlined_call_operand.vmem [shape: f32[1,32], index: 4, kind: input, shape index: {}]   ;;  %s3376_s5 = inlined_call_operand.vmem [shape: f32[1,32], index: 5, kind: input, shape index: {}]   ;;  %s3377_s6 = inlined_call_operand.hbm [shape: f32[2,32,32], index: 6, kind: input, shape index: {}]   ;;  %s3378_s7 = inlined_call_operand.hbm [shape: f32[2,32,32], index: 7, kind: input, shape index: {}]   ;;  %s3379_s8 = inlined_call_operand.hbm [shape: f32[2,32,32], index: 8, kind: input, shape index: {}]   ;;  %s3380_s9 = inlined_call_operand.hbm [shape: f32[2,32,32], index: 9, kind: input, shape index: {}]   ;;  %s3381_s10 = inlined_call_operand.vmem [shape: f32[2,1,32], index: 10, kind: input, shape index: {}]   ;;  %s3382_s11 = inlined_call_operand.vmem [shape: f32[2,1,32], index: 11, kind: input, shape index: {}]   ;;  %s3383_s12 = inlined_call_operand.vmem [shape: f32[2,1,32], index: 12, kind: input, shape index: {}]   ;;  %s3384_s13 = inlined_call_operand.vmem [shape: f32[2,1,32], index: 13, kind: input, shape index: {}]   ;;  %s3385_s14 = inlined_call_operand.vmem [shape: f32[2,1,32], index: 14, kind: input, shape index: {}]   ;;  %s3386_s15 = inlined_call_operand.vmem [shape: f32[2,1,32], index: 15, kind: input, shape index: {}]   ;;  %s3387_s16 = inlined_call_operand.hbm [shape: f32[2,32,64], index: 16, kind: input, shape index: {}]   ;;  %s3388_s17 = inlined_call_operand.vmem [shape: f32[2,1,64], index: 17, kind: input, shape index: {}]   ;;  %s3389_s18 = inlined_call_operand.vmem [shape: f32[2,64,32], index: 18, kind: input, shape index: {}]   ;;  %s3390_s19 = inlined_call_operand.vmem [shape: f32[2,1,32], index: 19, kind: input, shape index: {}]   ;;  %s3391_s20 = inlined_call_operand.vmem [shape: f32[2,1,32], index: 20, kind: input, shape index: {}]   ;;  %s3392_s21 = inlined_call_operand.vmem [shape: f32[2,1,32], index: 21, kind: input, shape index: {}]   ;;  %s3393_s22 = inlined_call_operand.hbm [shape: f32[32,256], index: 22, kind: input, shape index: {}]   ;;  %s3394_s23 = inlined_call_operand.vmem [shape: f32[1,256], index: 23, kind: input, shape index: {}]   ;;  %s3395_s24 = inlined_call_operand.vmem [shape: f32[256,128], index: 24, kind: input, shape index: {}]   ;;  %s3396_s25 = inlined_call_operand.vmem [shape: f32[1,128], index: 25, kind: input, shape index: {}]   ;;  %s3397_s26 = inlined_call_operand.hbm [shape: f32[2,8,128], index: 26, kind: output, shape index: {0}]   ;;  %s3398_s27 = inlined_call_operand.vmem [shape: s32[2,8,1], index: 27, kind: output, shape index: {1}]  }
   0x1   :  { %3415 = sst [smem:[#allocation27_spill]] %s3371_s0 }
   0x2   :  { %3416 = sst [smem:[#allocation28_spill]] %s3372_s1 }
   0x3   :  { %3417 = sst [smem:[#allocation29_spill]] %s3373_s2 }
   0x4   :  { %3418 = sst [smem:[#allocation30_spill]] %s3374_s3 }
   0x5   :  { %3419 = sst [smem:[#allocation31_spill]] %s3375_s4 }
   0x6   :  { %3420 = sst [smem:[#allocation32_spill]] %s3376_s5 }
   0x7   :  { %3421 = sst [smem:[#allocation33_spill]] %s3377_s6 }
   0x8   :  { %3422 = sst [smem:[#allocation34_spill]] %s3378_s7 }
   0x9   :  { %3423 = sst [smem:[#allocation35_spill]] %s3379_s8 }
   0xa   :  { %3424 = sst [smem:[#allocation36_spill]] %s3380_s9 }
   0xb   :  { %3425 = sst [smem:[#allocation37_spill]] %s3381_s10 }
   0xc   :  { %3426 = sst [smem:[#allocation38_spill]] %s3382_s11 }
   0xd   :  { %3427 = sst [smem:[#allocation39_spill]] %s3383_s12 }
   0xe   :  { %3428 = sst [smem:[#allocation40_spill]] %s3394_s23 }
   0xf   :  { %3429 = sst [smem:[#allocation41_spill]] %s3395_s24 }
  0x10   :  { %3430 = sst [smem:[#allocation42_spill]] %s3396_s25 }
  0x11   :  { %3431 = sst [smem:[#allocation43_spill]] %s3397_s26 }
  0x12   :  { %3432 = sst [smem:[#allocation44_spill]] %s3398_s27 }
  0x13   :  { %33 = vsyncpa [#allocation3], 0 }
  0x14   :  { %34 = vsyncpa [#allocation6], 0 }
  0x15   :  { %35 = vsyncpa [#allocation9], 0 }
  0x16   :  { %36 = vsyncpa [#allocation12], 0 }
  0x17   :  { %37 = vsyncpa [#allocation4], 0 }
  0x18   :  { %39 = vsyncpa [#allocation4 + $0x1], 0  ;;  %s2862_s7 = smov 0   ;;  %s2864_s4 = smov 0  }
  0x19   :  { %s2866_s8 = smov 0   ;;  %s2868_s30 = smov 0  }
  0x1a LB: > { %3433 = sst [smem:[#allocation19_spill]] %s2693_s7  ;;  %s2883_s9 = sadd.s32 4294967295, %s2705_s30   ;;  %s2705_s30 = sphi %s2868_s30, %s3470_s30   ;;  %s2701_s8 = sphi %s2866_s8, %s3473_s8   ;;  %s2697_s4 = sphi %s2864_s4, %s3472_s4   ;;  %s2693_s7 = sphi %s2862_s7, %s3471_s7  }
  0x1b   : > { %3434 = sst [smem:[#allocation20_spill]] %s2697_s4  ;;  %s2210_s5 = sadd.s32 4294967294, %s2705_s30  }
  0x1c   : > { %3435 = sst [smem:[#allocation21_spill]] %s2701_s8  ;;  %s2887_s28 = sadd.s32 1, %s2705_s30  }
  0x1d   : > { %3436 = sst [smem:[#allocation22_spill]] %s2705_s30  ;;  %s608_s0 = sadd.s32 1, %s2701_s8 }
  0x1e   : > { %3437 = sst [smem:[#allocation23_spill]] %s2887_s28  ;;  %s605_s10 = ssub.s32 %s2705_s30, %s2887_s28 }
  0x1f   : > { %p618_p0 = scmp.ne.s32.totalorder %s2701_s8, %s2697_s4  ;;  %p606_p1 = scmp.eq.s32.totalorder %s605_s10, 0 }
  0x20   : > { %p619_p2 = scmp.eq.s32.totalorder %s2883_s9, 1  ;;  %p624_p3 = scmp.ne.s32.totalorder %s2697_s4, %s2693_s7 }
  0x21   : > { %p625_p4 = scmp.eq.s32.totalorder %s2210_s5, 1  ;;  %p2211_p7 = scmp.ge.s32.totalorder %s2705_s30, 1 }
  0x22   : > { %s2898_s29 = scalar_select %p606_p1, %s2701_s8, %s608_s0  }
  0x23   : > { %p2900_p5 = por %p619_p2, %p618_p0  ;;  %p2904_p6 = por %p625_p4, %p624_p3 }
  0x24   : > { %3438 = sst [smem:[#allocation24_spill]] %s2898_s29  ;;  %p658_p8 = scmp.lt.s32.totalorder %s2705_s30, 3 }
  0x25   : > { %s3439_s1 = scalar_select %p2900_p5, 1, 0 }
  0x26   : > { %s3441_s6 = scalar_select %p2904_p6, 1, 0 }
  0x27   : > { %3440 = sst [smem:[#allocation25_spill]] %s3439_s1  ;;  %p2331_p9 = scmp.eq.s32.totalorder %s2883_s9, 0 }
  0x28   : > { %3442 = sst [smem:[#allocation26_spill]] %s3441_s6  ;;  %p2911_p10 = pnand %p2211_p7, %p658_p8 }
  0x29   : > { %s3444_s5 = sld [smem:[#allocation34_spill]]  ;;  %s2707_s7 = smov [#allocation5]  }
  0x2a   : > { %p2308_p11 = pneg %p2911_p10  ;;  %s3445_s8 = sld [smem:[#allocation36_spill]] }
  0x2b   : > { %s697_s30 = sshll.u32 %s2707_s7, 4  ;;  %s2708_s2 = smov 128   ;;  %s698_s30 = int_to_ptr.vmem [resolvable:$true] %s697_s30 }
  0x2c   : > { %p2925_p12 = pnand %p2331_p9, %p2308_p11  ;;  %s2709_s3 = smov 8  }
  0x2d   : > { %s3447_s10 = sld [smem:[#allocation33_spill]]  ;;  %s2711_s4 = smov [#allocation2]  }
  0x2e   : > { %s3448_s25 = sld [smem:[#allocation35_spill]]  ;;  %s683_s24 = sshll.u32 %s2711_s4, 4  ;;  %s684_s24 = int_to_ptr.vmem [resolvable:$true] %s683_s24 }
  0x2f   : > { %s695_s0 = sshll.u32 %s3444_s5, 4  ;;  %s2710_s5 = smov [#allocation8]   ;;  %s696_s0 = int_to_ptr.hbm [resolvable:$true] %s695_s0 }
  0x30   : > { %s723_s28 = sshll.u32 %s3445_s8, 4  ;;  %s725_s27 = sshll.u32 %s2710_s5, 4  ;;  %s724_s28 = int_to_ptr.hbm [resolvable:$true] %s723_s28  ;;  %s726_s27 = int_to_ptr.vmem [resolvable:$true] %s725_s27 }
  0x31   : > { %2314 = dma.hbm_to_vmem [thread:$0]  (!%p2925_p12), %s696_s0, 1024, %s698_s30, [#allocation6], %s2708_s2, %s2708_s2, %s2709_s3  }
  0x32   : > { %2320 = dma.hbm_to_vmem [thread:$0]  (!%p2925_p12), %s724_s28, 1024, %s726_s27, [#allocation9], %s2708_s2, %s2708_s2, %s2709_s3  }
  0x33   : > { %s681_s26 = sshll.u32 %s3447_s10, 4  ;;  %s2712_s30 = smov [#allocation7]   ;;  %s682_s26 = int_to_ptr.hbm [resolvable:$true] %s681_s26 }
  0x34   : > { %s709_s23 = sshll.u32 %s3448_s25, 4  ;;  %s711_s0 = sshll.u32 %s2712_s30, 4  ;;  %s710_s23 = int_to_ptr.hbm [resolvable:$true] %s709_s23  ;;  %s712_s0 = int_to_ptr.vmem [resolvable:$true] %s711_s0 }
  0x35   : > { %2311 = dma.hbm_to_vmem [thread:$0]  (!%p2925_p12), %s682_s26, 1024, %s684_s24, [#allocation3], %s2708_s2, %s2708_s2, %s2709_s3  }
  0x36   : > { %s755_s8 = sshll.u32 %s3387_s16, 4  ;;  %s784_s28 = sshll.u32 %s3393_s22, 4  ;;  %s756_s8 = int_to_ptr.hbm [resolvable:$true] %s755_s8  ;;  %s785_s28 = int_to_ptr.hbm [resolvable:$true] %s784_s28 }
  0x37   : > { %2317 = dma.hbm_to_vmem [thread:$0]  (!%p2925_p12), %s710_s23, 1024, %s712_s0, [#allocation6], %s2708_s2, %s2708_s2, %s2709_s3  }
  0x38   : > { %s2713_s4 = smov [#allocation10]   ;;  %s2714_s24 = smov [#allocation11]  }
  0x39   : > { %s757_s1 = sshll.u32 %s2713_s4, 4  ;;  %s786_s26 = sshll.u32 %s2714_s24, 4  ;;  %s758_s1 = int_to_ptr.vmem [resolvable:$true] %s757_s1  ;;  %s787_s26 = int_to_ptr.vmem [resolvable:$true] %s786_s26 }
  0x3a   : > { %2323 = dma.hbm_to_vmem [thread:$0]  (!%p2925_p12), %s756_s8, 1024, %s758_s1, [#allocation9], %s2708_s2, %s2708_s2, %s2709_s3  }
  0x3b   : > { %s2715_s10 = smov 256   ;;  %s2716_s7 = smov 16  }
  0x3c   : > { %2326 = dma.hbm_to_vmem [thread:$0]  (!%p2925_p12), %s785_s28, 1024, %s787_s26, [#allocation12], %s2715_s10, %s2715_s10, %s2716_s7  }
  0x3d   : > { %824 = sbr.rel (%p2911_p10) target bundleno = 4686 (0x124e), region = 124 }
  0x42   : > { %2672 = dma.done.wait (%p2331_p9), [#allocation3], 1024  }
  0x43   : > { %2674 = vsyncadd (%p2331_p9), [#allocation3], 4294966272 }
  0x44   : > { %2676 = dma.done.wait (%p2331_p9), [#allocation6], 2048  }
  0x45   : > { %2678 = vsyncadd (%p2331_p9), [#allocation6], 4294965248 }
  0x46   : > { %2680 = dma.done.wait (%p2331_p9), [#allocation9], 2048  }
  0x47   : > { %2682 = vsyncadd (%p2331_p9), [#allocation9], 4294965248 }
  0x48   : > { %2684 = dma.done.wait (%p2331_p9), [#allocation12], 1024  }
  0x49   : > { %2686 = vsyncadd (%p2331_p9), [#allocation12], 4294966272  ;;  %p928_p13 = scmp.lt.s32.totalorder %s2883_s9, 1  ;;  %v2717_v0 = vmov 0   ;;  %s3449_s3 = sld [smem:[#allocation27_spill]]  ;;  %vm966_vm0 = vcmask 1043456   ;;  %v940_v15 = vlaneseq }
  0x4a   : > { %2391 = vset.pattern.permute.xlu0 %v2717_v0  ;;  %s3450_s29 = sld [smem:[#allocation29_spill]]  ;;  %vm962_vm1 = vcmask 818176   ;;  %v2718_v18 = vmov 0.0   ;;  %vm992_vm3 = vcmask 261120   ;;  %v2719_v24 = vmov 32.0   ;;  %v1036_v36 = vld [vmem:[#allocation2 + $0x18] sm:$0xff] }
  0x4b   : > { %s2973_s23 = scalar_select %p928_p13, %s2883_s9, 1  ;;  %v3020_v16 = vand.u32 127, %v940_v15  ;;  %2415 = vrcp.f32 %v2719_v24  ;;  %v1040_v37 = vld [vmem:[#allocation5 + $0x18] sm:$0xff]  ;;  %v1035_v38 = vld [vmem:[#allocation2 + $0x10] sm:$0xff]  ;;  %v1034_v40 = vld [vmem:[#allocation2 + $0x8] sm:$0xff]  ;;  %vm1124_vm8 = vcmask 130048  }
  0x4c   : > { %s3451_s11 = sld [smem:[#allocation30_spill]]  ;;  %1092 = vmatpush.msra.mxu2 %v1040_v37  ;;  %v1039_v39 = vld [vmem:[#allocation5 + $0x10] sm:$0xff]  ;;  %v1038_v41 = vld [vmem:[#allocation5 + $0x8] sm:$0xff]  ;;  %v1033_v42 = vld [vmem:[#allocation2] sm:$0xff]  ;;  %s2720_s4 = smov 112   ;;  %vm1156_vm10 = vcmask 64512  }
  0x4d   : > { %s3413_s6 = sshll.u32 %s2973_s23, 3  ;;  %v1037_v43 = vld [vmem:[#allocation5] sm:$0xff]  ;;  %v1044_v44 = vld [vmem:[#allocation7 + $0x18] sm:$0xff]  ;;  %v1043_v45 = vld [vmem:[#allocation7 + $0x10] sm:$0xff]  ;;  %s3453_s8 = sld [smem:[#allocation32_spill]]  ;;  %vm1395_vm14 = vcmask 523264  }
  0x4e   : > { %1093 = vmatpush.msra.mxu2 %v1039_v39  ;;  %v1042_v46 = vld [vmem:[#allocation7 + $0x8] sm:$0xff]  ;;  %v1041_v49 = vld [vmem:[#allocation7] sm:$0xff]  ;;  %s3454_s28 = sld [smem:[#allocation37_spill]] }
  0x4f   : > { %s931_s30 = scalar_lea.vmem %s3449_s3, %s3413_s6  ;;  %s3455_s26 = sld [smem:[#allocation38_spill]]  ;;  %v1045_v39 = vld [vmem:[#allocation8] sm:$0xff] }
  0x50   : > { %v939_v1 = vld [vmem:[%s931_s30] sm:$0xff]  ;;  %v959_v3 = vld [vmem:[%s3450_s29 + $0x58] sm:$0xff]  ;;  %v958_v4 = vld [vmem:[%s3450_s29 + $0x50] sm:$0xff]  ;;  %1094 = vmatpush.msra.mxu2 %v1038_v41  ;;  %s3452_s30 = sld [smem:[#allocation31_spill]] }
  0x51   : > { %v960_v2 = vld [vmem:[%s3450_s29 + $0x60] sm:$0xf]  ;;  %943 = vperm.xlu0 %2391, %v939_v1   ;;  %v957_v5 = vld [vmem:[%s3450_s29 + $0x48] sm:$0xff]  ;;  %v955_v7 = vld [vmem:[%s3450_s29 + $0x38] sm:$0xff]  ;;  %v2416_v25 = vpop.eup %2415  ;;  %s3456_s12 = sld [smem:[#allocation39_spill]] }
  0x52   : > { %2230 = vmatpush.msk.msra.mxu0 %vm966_vm0, %v960_v2  ;;  %v956_v6 = vld [vmem:[%s3450_s29 + $0x40] sm:$0xff]  ;;  %v954_v8 = vld [vmem:[%s3450_s29 + $0x30] sm:$0xff]  ;;  %v953_v9 = vld [vmem:[%s3450_s29 + $0x28] sm:$0xff]  ;;  %v997_v26 = vmul.f32 32.0, %v2416_v25  ;;  %vm1001_vm4 = vweird.f32 %v2416_v25  ;;  %1095 = vmatpush.msra.mxu2 %v1037_v43  ;;  %s3457_s3 = sld [smem:[#allocation28_spill]] }
  0x53   : > { %v952_v10 = vld [vmem:[%s3450_s29 + $0x20] sm:$0xff]  ;;  %v951_v11 = vld [vmem:[%s3450_s29 + $0x18] sm:$0xff]  ;;  %v950_v12 = vld [vmem:[%s3450_s29 + $0x10] sm:$0xff]  ;;  %s3460_s7 = sld [smem:[#allocation20_spill]] }
  0x54   : > { %974 = vmatpush.msra.mxu0 %v959_v3  ;;  %v949_v13 = vld [vmem:[%s3450_s29 + $0x8] sm:$0xff]  ;;  %v948_v14 = vld [vmem:[%s3450_s29] sm:$0xff]  ;;  %v998_v27 = vsub.f32 1.0, %v997_v26  ;;  %1116 = vmatpush.msrb.mxu2 %v1044_v44  ;;  %s3462_s24 = sld [smem:[#allocation42_spill]] }
  0x55   : > { %v961_v20 = vld [vmem:[%s3451_s11] sm:$0xff]  ;;  %s3464_s0 = sld [smem:[#allocation43_spill]] }
  0x56   : > { %975 = vmatpush.msra.mxu0 %v958_v4  ;;  %v999_v28 = vmul.f32 %v2416_v25, %v998_v27  ;;  %1117 = vmatpush.msrb.mxu2 %v1043_v45  ;;  %v2392_v57 = vld [vmem:[%s3452_s30] ss:$0 sm:$0xff]  ;;  %v1047_v45 = vld [vmem:[#allocation8 + $0x10] sm:$0xff] }
  0x57   : > { %v2393_v60 = vld [vmem:[%s3453_s8] ss:$0 sm:$0xff]  ;;  %s3461_s8 = sld [smem:[#allocation40_spill]] }
  0x58   : > { %976 = vmatpush.msra.mxu0 %v957_v5  ;;  %v1000_v29 = vadd.f32 %v2416_v25, %v999_v28  ;;  %1118 = vmatpush.msrb.mxu2 %v1042_v46  ;;  %v2394_v63 = vld [vmem:[%s3454_s28] ss:$0 sm:$0xff]  ;;  %s934_s30 = scalar_lea.vmem %s3457_s3, %s2973_s23 }
  0x59   : > { %v2395_v2 = vld [vmem:[%s3455_s26] ss:$0 sm:$0xff]  ;;  %s919_s27 = sand.u32 1, %s3460_s7   ;;  %s2279_s7 = sshll.u32 %s2883_s9, 3 }
  0x5a   : > { %977 = vmatpush.msra.mxu0 %v956_v6  ;;  %v3027_v30 = vsel %vm1001_vm4, %v2416_v25, %v1000_v29  ;;  %1119 = vmatpush.msrb.mxu2 %v1041_v49  ;;  %v2396_v5 = vld [vmem:[%s3456_s12] ss:$0 sm:$0xff]  ;;  %s2226_s10 = sshll.u32 %s919_s27, 3  ;;  %s2036_s1 = scalar_lea.sflag [#allocation4], %s919_s27 }
  0x5b   : > { %s921_s11 = scalar_lea.vmem [#allocation13], %s2226_s10  ;;  %s2050_s5 = scalar_lea.hbm %s3464_s0, %s2279_s7 }
  0x5c   : > { %978 = vmatpush.msra.mxu0 %v955_v7  ;;  %s2054_s25 = sshll.u32 %s2050_s5, 4  ;;  %s2647_s9 = scalar_lea.hbm %s3464_s0, 16  ;;  %s2055_s25 = int_to_ptr.hbm [resolvable:$true] %s2054_s25 }
  0x5e   : > { %979 = vmatpush.msra.mxu0 %v954_v8 }
  0x60   : > { %980 = vmatpush.msra.mxu0 %v953_v9 }
  0x62   : > { %981 = vmatpush.msra.mxu0 %v952_v10  ;;  %v1030_v10 = vld [vmem:[%s934_s30] sm:$0x1] }
  0x63   : > { %vm1031_vm9 = vcmp.ne.s32.totalorder %v1030_v10, 0 }
  0x64   : > { %982 = vmatpush.msra.mxu0 %v951_v11  ;;  %v2721_v11 = vmov -1e+09  }
  0x66   : > { %983 = vmatpush.msra.mxu0 %v950_v12  ;;  %v1032_v12 = vsel %vm1031_vm9, 0.0, %v2721_v11  ;;  %v2399_v11 = vld [vmem:[%s3386_s15] ss:$0 sm:$0xff] }
  0x68   : > { %984 = vmatpush.msra.mxu0 %v949_v13  ;;  %v3065_v13 = vperm.slane %v1032_v12, 0 }
  0x6a   : > { %985 = vmatpush.msra.mxu0 %v948_v14 }
  0x6c   : > { %1068 = vmatpush.msrb.mxu0 %v1036_v36 }
  0x6e   : > { %1069 = vmatpush.msrb.mxu0 %v1035_v38  ;;  %v1046_v38 = vld [vmem:[#allocation8 + $0x8] sm:$0xff] }
  0x70   : > { %1070 = vmatpush.msrb.mxu0 %v1034_v40  ;;  %v1048_v40 = vld [vmem:[#allocation8 + $0x18] sm:$0xff] }
  0x72   : > { %1071 = vmatpush.msrb.mxu0 %v1033_v42 }
  0xc3   : > { %v944_v17 = vpop.permute.xlu0 %943 }
  0xc4   : > { %vm945_vm2 = vcmp.eq.s32.totalorder %v3020_v16, %v944_v17 }
  0xc5   : > { %v2229_v19 = vsel %vm945_vm2, 1.0, %v2718_v18 }
  0xc6   : > { %2231 = vmatmul.msk.f32.vlgmr.msra.gmra.mxu0 %vm962_vm1, %v2229_v19 }
 0x143   : > { %v987_v21 = vpop.f32.mrf.mxu0 }
 0x144   : > { %v988_v22 = vadd.f32 %v987_v21, %v961_v20 }
 0x146   : > { %v993_v23 = vsel %vm992_vm3, %v988_v22, 0.0 }
 0x147   : > { %994 = vadd.xlane.f32.xlu0 %v993_v23 }
 0x1ba   : > { %v995_v31 = vpop.xlane.xlu0 %994 }
 0x1bb   : > { %v1003_v32 = vmul.f32 %v3027_v30, %v995_v31 }
 0x1bd   : > { %v1004_v33 = vsub.f32 %v988_v22, %v1003_v32 }
 0x1bf   : > { %v1005_v34 = vmul.f32 %v1004_v33, %v1004_v33 }
 0x1c1   : > { %v1006_v35 = vsel %vm992_vm3, %v1005_v34, 0.0 }
 0x1c2   : > { %1007 = vadd.xlane.f32.xlu1 %v1006_v35 }
 0x235   : > { %v1008_v47 = vpop.xlane.xlu1 %1007 }
 0x236   : > { %v1009_v48 = vmul.f32 %v1008_v47, %v3027_v30  ;;  %v2397_v47 = vld [vmem:[%s3384_s13] ss:$0 sm:$0xff] }
 0x238   : > { %v1010_v50 = vadd.f32 1e-12, %v1009_v48 }
 0x23a   : > { %2417 = vrsqrt.f32 %v1010_v50  ;;  %vm1017_vm6 = vweird.f32 %v1010_v50 }
 0x240   : > { %v2418_v51 = vpop.eup %2417 }
 0x241   : > { %v1012_v52 = vmul.f32 %v2418_v51, %v1010_v50  ;;  %vm1018_vm5 = vweird.f32 %v2418_v51 }
 0x242   : > { %vm1019_vm7 = vmor %vm1017_vm6, %vm1018_vm5 }
 0x243   : > { %v1013_v53 = vmul.f32 %v2418_v51, %v1012_v52 }
 0x245   : > { %v1014_v54 = vmul.f32 0.5, %v1013_v53 }
 0x247   : > { %v1015_v55 = vsub.f32 1.5, %v1014_v54 }
 0x249   : > { %v1016_v56 = vmul.f32 %v2418_v51, %v1015_v55 }
 0x24b   : > { %v1020_v58 = vsel %vm1019_vm7, %v2418_v51, %v1016_v56 }
 0x24c   : > { %v1021_v59 = vmul.f32 %v1020_v58, %v1004_v33 }
 0x24e   : > { %v1025_v61 = vmul.f32 %v2392_v57, %v1021_v59  ;;  %v1346_v59 = vld [vmem:[#allocation10 + $0x18] sm:$0xff] }
 0x250   : > { %v3038_v62 = vadd.f32 %v2393_v60, %v1025_v61  ;;  %v1345_v60 = vld [vmem:[#allocation10 + $0x10] sm:$0xff]  ;;  %v1344_v61 = vld [vmem:[#allocation10 + $0x8] sm:$0xff] }
 0x252   : > { %2232 = vmatmul.msk.f32.vlgmr.msrb.gmra.mxu0 %vm992_vm3, %v3038_v62  ;;  %2233 = vmatmul.msk.f32.vlgmr.msra.gmra.mxu2 %vm992_vm3, %v3038_v62 }
 0x25a   : > { %2234 = vmatmul.msk.f32.vlgmr.msrb.gmra.mxu2 %vm992_vm3, %v3038_v62 }
 0x2cf   : > { %v1073_v0 = vpop.f32.mrf.mxu0 }
 0x2d0   : > { %v1074_v1 = vadd.f32 %v2394_v63, %v1073_v0  ;;  %v1343_v63 = vld [vmem:[#allocation10] sm:$0xff] }
 0x2d2   : > { %1191 = vrot.lane.b32.xlu2 %v1074_v1, %s2720_s4 }
 0x2d5   : > { %v1097_v3 = vpop.f32.mrf.mxu2 }
 0x2d6   : > { %v1098_v4 = vadd.f32 %v2395_v2, %v1097_v3 }
 0x2d8   : > { %1193 = vrot.lane.b32.xlu1 %v1098_v4, %s2720_s4  ;;  %2235 = vmatpush.xpose.msk.msra.mxu0 %vm1124_vm8, %v1098_v4 }
 0x2db   : > { %2236 = vmatmul.msk.f32.vlgmr.msra.gmra.mxu0 %vm1124_vm8, %v1074_v1 }
 0x2dd   : > { %v1121_v6 = vpop.f32.mrf.mxu2 }
 0x2de   : > { %v1122_v7 = vadd.f32 %v2396_v5, %v1121_v6 }
 0x2e0   : > { %1186 = vmatpush.msra.mxu2 %v1122_v7 }
 0x2e2   : > { %1276 = vmatpush.msrb.mxu2 %v1048_v40 }
 0x2e4   : > { %1277 = vmatpush.msrb.mxu2 %v1047_v45 }
 0x32c   : > { %v1192_v9 = vpop.permute.xlu2 %1191 }
 0x34a   : > { %v1194_v8 = vpop.permute.xlu1 %1193 }
 0x34b   : > { %2238 = vmatpush.xpose.msk.msra.mxu3 %vm1124_vm8, %v1194_v8  ;;  %v2398_v8 = vld [vmem:[%s3385_s14] ss:$0 sm:$0xff] }
 0x34e   : > { %2239 = vmatmul.msk.f32.vlgmr.msra.gmra.mxu3 %vm1124_vm8, %v1192_v9 }
 0x358   : > { %v1148_v14 = vpop.f32.mrf.mxu0 }
 0x359   : > { %v1151_v15 = vmul.f32 0.25, %v1148_v14 }
 0x35b   : > { %v1155_v17 = vadd.f32 %v3065_v13, %v1151_v15  ;;  %v1390_v15 = vld [vmem:[%s3389_s18 + $0x38] sm:$0xff] }
 0x35d   : > { %v1157_v18 = vsel %vm1156_vm10, %v1155_v17, -inf }
 0x35e   : > { %1158 = vmax.xlane.f32.xlu2 %v1157_v18  ;;  %v1388_v18 = vld [vmem:[%s3389_s18 + $0x28] sm:$0xff] }
 0x3d1   : > { %v1216_v19 = vpop.f32.mrf.mxu3  ;;  %v1159_v20 = vpop.xlane.xlu2 %1158 }
 0x3d2   : > { %v1219_v21 = vmul.f32 0.25, %v1216_v19  ;;  %v1160_v22 = vsub.f32 %v1155_v17, %v1159_v20  ;;  %v1389_v17 = vld [vmem:[%s3389_s18 + $0x30] sm:$0xff]  ;;  %v1387_v19 = vld [vmem:[%s3389_s18 + $0x20] sm:$0xff]  ;;  %v1386_v20 = vld [vmem:[%s3389_s18 + $0x18] sm:$0xff] }
 0x3d4   : > { %v1161_v23 = vmul.f32 1.442695, %v1160_v22  ;;  %v1220_v24 = vadd.f32 %v1219_v21, %v3065_v13  ;;  %v1385_v21 = vld [vmem:[%s3389_s18 + $0x10] sm:$0xff]  ;;  %v1384_v22 = vld [vmem:[%s3389_s18 + $0x8] sm:$0xff] }
 0x3d6   : > { %2419 = vpow2.f32 %v1161_v23  ;;  %v1221_v25 = vsel %vm1156_vm10, %v1220_v24, -inf  ;;  %v1383_v23 = vld [vmem:[%s3389_s18] sm:$0xff] }
 0x3d7   : > { %1222 = vmax.xlane.f32.xlu1 %v1221_v25 }
 0x3dc   : > { %v2420_v26 = vpop.eup %2419 }
 0x3dd   : > { %v1163_v27 = vsel %vm1156_vm10, %v2420_v26, 0.0 }
 0x3de   : > { %1164 = vadd.xlane.f32.xlu2 %v1163_v27 }
 0x3f6   : > { %1233 = vrot.lane.b32.xlu2 %v1122_v7, %s2720_s4 }
 0x44a   : > { %v1223_v28 = vpop.xlane.xlu1 %1222 }
 0x44b   : > { %v1224_v29 = vsub.f32 %v1220_v24, %v1223_v28  ;;  %v2400_v24 = vld [vmem:[%s3388_s17] ss:$0 sm:$0xff] }
 0x44d   : > { %v1225_v31 = vmul.f32 1.442695, %v1224_v29 }
 0x44f   : > { %2421 = vpow2.f32 %v1225_v31 }
 0x451   : > { %v1165_v32 = vpop.xlane.xlu2 %1164 }
 0x452   : > { %2423 = vrcp.f32 %v1165_v32 }
 0x455   : > { %v2422_v33 = vpop.eup %2421 }
 0x456   : > { %v1227_v34 = vsel %vm1156_vm10, %v2422_v33, 0.0 }
 0x457   : > { %1228 = vadd.xlane.f32.xlu0 %v1227_v34 }
 0x458   : > { %v2424_v35 = vpop.eup %2423 }
 0x459   : > { %v1167_v36 = vmul.f32 %v2424_v35, %v2420_v26  ;;  %v1234_v37 = vpop.permute.xlu2 %1233 }
 0x45a   : > { %1254 = vmatpush.msra.mxu1 %v1234_v37  ;;  %v2401_v37 = vld [vmem:[%s3390_s19] ss:$0 sm:$0xff] }
 0x45b   : > { %2237 = vmatmul.msk.f32.vlgmr.msra.gmra.mxu2 %vm1156_vm10, %v1167_v36 }
 0x45c   : > { %1299 = vmatpush.msrb.mxu1 %v1046_v38  ;;  %1407 = vmatpush.msra.mxu2 %v1390_v15 }
 0x45e   : > { %1300 = vmatpush.msrb.mxu1 %v1045_v39  ;;  %1408 = vmatpush.msra.mxu2 %v1389_v17 }
 0x460   : > { %1409 = vmatpush.msra.mxu2 %v1388_v18  ;;  %v2406_v18 = vld [vmem:[%s3454_s28 + $0x1] ss:$0 sm:$0xff] }
 0x462   : > { %1410 = vmatpush.msra.mxu2 %v1387_v19 }
 0x464   : > { %1411 = vmatpush.msra.mxu2 %v1386_v20 }
 0x466   : > { %1412 = vmatpush.msra.mxu2 %v1385_v21 }
 0x468   : > { %1413 = vmatpush.msra.mxu2 %v1384_v22 }
 0x46a   : > { %1414 = vmatpush.msra.mxu2 %v1383_v23 }
 0x4ca   : > { %v1229_v41 = vpop.xlane.xlu0 %1228 }
 0x4cb   : > { %2425 = vrcp.f32 %v1229_v41 }
 0x4d1   : > { %v2426_v42 = vpop.eup %2425 }
 0x4d2   : > { %v1231_v43 = vmul.f32 %v2426_v42, %v2422_v33 }
 0x4d4   : > { %2240 = vmatmul.msk.f32.vlgmr.msra.gmra.mxu1 %vm1156_vm10, %v1231_v43 }
 0x4d5   : > { %1366 = vmatpush.msra.mxu1 %v1346_v59 }
 0x4d7   : > { %1367 = vmatpush.msra.mxu1 %v1345_v60 }
 0x4d9   : > { %1368 = vmatpush.msra.mxu1 %v1344_v61 }
 0x4db   : > { %1369 = vmatpush.msra.mxu1 %v1343_v63 }
 0x4de   : > { %v1188_v44 = vpop.f32.mrf.mxu2 }
 0x4df   : > { %2242 = vmatmul.msk.f32.vlgmr.msrb.gmra.mxu1 %vm1124_vm8, %v1188_v44 }
 0x551   : > { %v1256_v46 = vpop.f32.mrf.mxu1 }
 0x552   : > { %2241 = vmatmul.msk.f32.vlgmr.msrb.gmra.mxu2 %vm1124_vm8, %v1256_v46 }
 0x55c   : > { %v1302_v48 = vpop.f32.mrf.mxu1 }
 0x5d5   : > { %v1279_v49 = vpop.f32.mrf.mxu2 }
 0x5d6   : > { %v1303_v50 = vadd.f32 %v1302_v48, %v1279_v49  ;;  %v1461_v48 = vld [vmem:[#allocation5 + $0x38] sm:$0xff] }
 0x5d7   : > { %v1466_v49 = vld [vmem:[#allocation7 + $0x38] sm:$0xff]  ;;  %1517 = vmatpush.msrb.mxu0 %v1461_v48 }
 0x5d8   : > { %v1309_v51 = vadd.f32 %v2397_v47, %v1303_v50  ;;  %v1456_v47 = vld [vmem:[#allocation2 + $0x38] sm:$0xff]  ;;  %1542 = vmatpush.msrb.mxu1 %v1466_v49  ;;  %v1455_v50 = vld [vmem:[#allocation2 + $0x30] sm:$0xff] }
 0x5d9   : > { %1492 = vmatpush.msrb.mxu3 %v1456_v47 }
 0x5da   : > { %v1310_v52 = vadd.f32 %v1309_v51, %v3038_v62  ;;  %v1460_v51 = vld [vmem:[#allocation5 + $0x30] sm:$0xff] }
 0x5db   : > { %1493 = vmatpush.msrb.mxu3 %v1455_v50  ;;  %1518 = vmatpush.msrb.mxu0 %v1460_v51  ;;  %v1471_v51 = vld [vmem:[#allocation8 + $0x38] sm:$0xff] }
 0x5dc   : > { %v1313_v53 = vsel %vm992_vm3, %v1310_v52, 0.0 }
 0x5dd   : > { %1314 = vadd.xlane.f32.xlu0 %v1313_v53  ;;  %v1454_v53 = vld [vmem:[#allocation2 + $0x28] sm:$0xff] }
 0x5de   : > { %1494 = vmatpush.msrb.mxu3 %v1454_v53 }
 0x650   : > { %v1315_v54 = vpop.xlane.xlu0 %1314 }
 0x651   : > { %v1316_v55 = vmul.f32 %v1315_v54, %v3027_v30  ;;  %v1459_v54 = vld [vmem:[#allocation5 + $0x28] sm:$0xff] }
 0x652   : > { %1519 = vmatpush.msrb.mxu0 %v1459_v54  ;;  %v2407_v54 = vld [vmem:[%s3384_s13 + $0x1] ss:$0 sm:$0xff] }
 0x653   : > { %v1317_v56 = vsub.f32 %v1310_v52, %v1316_v55  ;;  %v1465_v52 = vld [vmem:[#allocation7 + $0x30] sm:$0xff]  ;;  %v1464_v55 = vld [vmem:[#allocation7 + $0x28] sm:$0xff] }
 0x654   : > { %1543 = vmatpush.msrb.mxu1 %v1465_v52  ;;  %v1470_v52 = vld [vmem:[#allocation8 + $0x30] sm:$0xff] }
 0x655   : > { %v1318_v57 = vmul.f32 %v1317_v56, %v1317_v56 }
 0x656   : > { %1544 = vmatpush.msrb.mxu1 %v1464_v55 }
 0x657   : > { %v1319_v58 = vsel %vm992_vm3, %v1318_v57, 0.0  ;;  %v1458_v57 = vld [vmem:[#allocation5 + $0x20] sm:$0xff] }
 0x658   : > { %1320 = vadd.xlane.f32.xlu0 %v1319_v58  ;;  %v1463_v58 = vld [vmem:[#allocation7 + $0x20] sm:$0xff]  ;;  %1520 = vmatpush.msrb.mxu0 %v1458_v57 }
 0x659   : > { %1545 = vmatpush.msrb.mxu1 %v1463_v58 }
 0x6cb   : > { %v1321_v62 = vpop.xlane.xlu0 %1320 }
 0x6cc   : > { %v1322_v0 = vmul.f32 %v1321_v62, %v3027_v30 }
 0x6ce   : > { %v1323_v1 = vadd.f32 1e-12, %v1322_v0 }
 0x6d0   : > { %2427 = vrsqrt.f32 %v1323_v1  ;;  %vm1330_vm12 = vweird.f32 %v1323_v1 }
 0x6d6   : > { %v2428_v2 = vpop.eup %2427 }
 0x6d7   : > { %v1325_v3 = vmul.f32 %v2428_v2, %v1323_v1  ;;  %vm1331_vm11 = vweird.f32 %v2428_v2 }
 0x6d8   : > { %vm1332_vm13 = vmor %vm1330_vm12, %vm1331_vm11 }
 0x6d9   : > { %v1326_v4 = vmul.f32 %v2428_v2, %v1325_v3 }
 0x6db   : > { %v1327_v5 = vmul.f32 0.5, %v1326_v4  ;;  %v2402_v4 = vld [vmem:[%s3391_s20] ss:$0 sm:$0xff] }
 0x6dd   : > { %v1328_v6 = vsub.f32 1.5, %v1327_v5 }
 0x6df   : > { %v1329_v7 = vmul.f32 %v2428_v2, %v1328_v6 }
 0x6e1   : > { %v1333_v9 = vsel %vm1332_vm13, %v2428_v2, %v1329_v7  ;;  %v2403_v7 = vld [vmem:[%s3392_s21] ss:$0 sm:$0xff] }
 0x6e2   : > { %v1334_v10 = vmul.f32 %v1333_v9, %v1317_v56  ;;  %v1453_v56 = vld [vmem:[#allocation2 + $0x20] sm:$0xff] }
 0x6e3   : > { %1495 = vmatpush.msrb.mxu3 %v1453_v56 }
 0x6e4   : > { %v1338_v12 = vmul.f32 %v2398_v8, %v1334_v10  ;;  %v2404_v10 = vld [vmem:[%s3455_s26 + $0x1] ss:$0 sm:$0xff] }
 0x6e6   : > { %v1342_v14 = vadd.f32 %v2399_v11, %v1338_v12  ;;  %v2405_v11 = vld [vmem:[%s3456_s12 + $0x1] ss:$0 sm:$0xff] }
 0x6e8   : > { %2243 = vmatmul.msk.f32.vlgmr.msra.gmra.mxu1 %vm992_vm3, %v1342_v14 }
 0x765   : > { %v1371_v25 = vpop.f32.mrf.mxu1 }
 0x766   : > { %v1372_v26 = vadd.f32 %v2400_v24, %v1371_v25 }
 0x768   : > { %v1375_v27 = vmul.f32 0.044715, %v1372_v26  ;;  %v1374_v34 = vmul.f32 0.5, %v1372_v26 }
 0x76a   : > { %v1376_v28 = vmul.f32 %v1375_v27, %v1372_v26 }
 0x76c   : > { %v1377_v29 = vmul.f32 %v1376_v28, %v1372_v26 }
 0x76e   : > { %v1378_v31 = vadd.f32 %v1377_v29, %v1372_v26 }
 0x770   : > { %v1379_v32 = vmul.f32 0.7978846, %v1378_v31 }
 0x772   : > { %2429 = vtanh.f32 %v1379_v32 }
 0x778   : > { %v2430_v33 = vpop.eup %2429 }
 0x779   : > { %v1381_v35 = vadd.f32 1.0, %v2430_v33 }
 0x77b   : > { %v1382_v36 = vmul.f32 %v1381_v35, %v1374_v34 }
 0x77d   : > { %2244 = vmatmul.msk.f32.vlgmr.msra.gmra.mxu2 %vm1395_vm14, %v1382_v36 }
 0x800   : > { %v1416_v38 = vpop.f32.mrf.mxu2 }
 0x801   : > { %v1417_v39 = vadd.f32 %v2401_v37, %v1416_v38 }
 0x803   : > { %v1419_v40 = vadd.f32 %v1417_v39, %v1342_v14 }
 0x805   : > { %v1422_v41 = vsel %vm992_vm3, %v1419_v40, 0.0 }
 0x806   : > { %1423 = vadd.xlane.f32.xlu0 %v1422_v41 }
 0x879   : > { %v1424_v42 = vpop.xlane.xlu0 %1423 }
 0x87a   : > { %v1425_v43 = vmul.f32 %v1424_v42, %v3027_v30 }
 0x87c   : > { %v1426_v44 = vsub.f32 %v1419_v40, %v1425_v43 }
 0x87e   : > { %v1427_v45 = vmul.f32 %v1426_v44, %v1426_v44 }
 0x880   : > { %v1428_v46 = vsel %vm992_vm3, %v1427_v45, 0.0  ;;  %v1468_v45 = vld [vmem:[#allocation8 + $0x20] sm:$0xff] }
 0x881   : > { %1429 = vadd.xlane.f32.xlu1 %v1428_v46 }
 0x8f4   : > { %v1430_v59 = vpop.xlane.xlu1 %1429 }
 0x8f5   : > { %v1431_v60 = vmul.f32 %v1430_v59, %v3027_v30 }
 0x8f7   : > { %v1432_v61 = vadd.f32 1e-12, %v1431_v60 }
 0x8f9   : > { %2431 = vrsqrt.f32 %v1432_v61  ;;  %vm1439_vm0 = vweird.f32 %v1432_v61 }
 0x8ff   : > { %v2432_v63 = vpop.eup %2431 }
 0x900   : > { %v1434_v62 = vmul.f32 %v2432_v63, %v1432_v61  ;;  %vm1440_vm15 = vweird.f32 %v2432_v63 }
 0x901   : > { %vm1441_vm1 = vmor %vm1439_vm0, %vm1440_vm15 }
 0x902   : > { %v1435_v0 = vmul.f32 %v2432_v63, %v1434_v62 }
 0x904   : > { %v1436_v1 = vmul.f32 0.5, %v1435_v0 }
 0x906   : > { %v1437_v2 = vsub.f32 1.5, %v1436_v1 }
 0x908   : > { %v1438_v3 = vmul.f32 %v2432_v63, %v1437_v2  ;;  %v1771_v2 = vld [vmem:[#allocation10 + $0x38] sm:$0xff] }
 0x90a   : > { %v1442_v5 = vsel %vm1441_vm1, %v2432_v63, %v1438_v3  ;;  %v1770_v3 = vld [vmem:[#allocation10 + $0x30] sm:$0xff] }
 0x90b   : > { %v1443_v6 = vmul.f32 %v1442_v5, %v1426_v44  ;;  %v1469_v44 = vld [vmem:[#allocation8 + $0x28] sm:$0xff]  ;;  %v1768_v5 = vld [vmem:[#allocation10 + $0x20] sm:$0xff] }
 0x90d   : > { %v1447_v8 = vmul.f32 %v2402_v4, %v1443_v6  ;;  %v1769_v4 = vld [vmem:[#allocation10 + $0x28] sm:$0xff] }
 0x90f   : > { %v3134_v9 = vadd.f32 %v2403_v7, %v1447_v8 }
 0x911   : > { %2246 = vmatmul.msk.f32.vlgmr.msrb.gmra.mxu3 %vm992_vm3, %v3134_v9  ;;  %2248 = vmatmul.msk.f32.vlgmr.msrb.gmra.mxu0 %vm992_vm3, %v3134_v9 }
 0x912   : > { %2250 = vmatmul.msk.f32.vlgmr.msrb.gmra.mxu1 %vm992_vm3, %v3134_v9 }
 0x98e   : > { %v1522_v12 = vpop.f32.mrf.mxu0 }
 0x98f   : > { %v1523_v14 = vadd.f32 %v2404_v10, %v1522_v12  ;;  %v1547_v15 = vpop.f32.mrf.mxu1 }
 0x990   : > { %v1548_v17 = vadd.f32 %v2405_v11, %v1547_v15 }
 0x991   : > { %1614 = vrot.lane.b32.xlu2 %v1523_v14, %s2720_s4  ;;  %2251 = vmatpush.xpose.msk.msra.mxu3 %vm1124_vm8, %v1523_v14 }
 0x992   : > { %1607 = vmatpush.msra.mxu0 %v1548_v17 }
 0x994   : > { %v1497_v19 = vpop.f32.mrf.mxu3  ;;  %1720 = vmatpush.msrb.mxu0 %v1469_v44 }
 0x995   : > { %v1498_v20 = vadd.f32 %v2406_v18, %v1497_v19  ;;  %1697 = vmatpush.msrb.mxu3 %v1471_v51 }
 0x996   : > { %1721 = vmatpush.msrb.mxu0 %v1468_v45 }
 0x997   : > { %1612 = vrot.lane.b32.xlu0 %v1498_v20, %s2720_s4  ;;  %2252 = vmatmul.msk.f32.vlgmr.msra.gmra.mxu3 %vm1124_vm8, %v1498_v20  ;;  %v2409_v20 = vld [vmem:[%s3386_s15 + $0x1] ss:$0 sm:$0xff] }
 0x998   : > { %1698 = vmatpush.msrb.mxu3 %v1470_v52 }
 0x9eb   : > { %v1615_v21 = vpop.permute.xlu2 %1614 }
 0x9ec   : > { %2254 = vmatpush.xpose.msk.msra.mxu1 %vm1124_vm8, %v1615_v21 }
 0x9f0   : > { %1792 = vmatpush.msrb.mxu1 %v1771_v2 }
 0x9f2   : > { %1793 = vmatpush.msrb.mxu1 %v1770_v3 }
 0x9f4   : > { %1794 = vmatpush.msrb.mxu1 %v1769_v4 }
 0x9f6   : > { %1795 = vmatpush.msrb.mxu1 %v1768_v5 }
 0xa09   : > { %v1613_v22 = vpop.permute.xlu0 %1612 }
 0xa0a   : > { %2255 = vmatmul.msk.f32.vlgmr.msra.gmra.mxu1 %vm1124_vm8, %v1613_v22 }
 0xa1a   : > { %v1573_v23 = vpop.f32.mrf.mxu3 }
 0xa1b   : > { %v1576_v24 = vmul.f32 0.25, %v1573_v23  ;;  %v2271_v23 = vld [vmem:[%s3389_s18 + $0x78] sm:$0xff] }
 0xa1d   : > { %v1577_v25 = vadd.f32 %v1576_v24, %v3065_v13  ;;  %v2270_v24 = vld [vmem:[%s3389_s18 + $0x70] sm:$0xff] }
 0xa1f   : > { %v1578_v26 = vsel %vm1156_vm10, %v1577_v25, -inf }
 0xa20   : > { %1579 = vmax.xlane.f32.xlu2 %v1578_v26  ;;  %v2268_v26 = vld [vmem:[%s3389_s18 + $0x60] sm:$0xff] }
 0xa87   : > { %v1637_v27 = vpop.f32.mrf.mxu1 }
 0xa88   : > { %v1640_v28 = vmul.f32 0.25, %v1637_v27  ;;  %v2267_v27 = vld [vmem:[%s3389_s18 + $0x58] sm:$0xff] }
 0xa8a   : > { %v1641_v29 = vadd.f32 %v1640_v28, %v3065_v13  ;;  %v2266_v28 = vld [vmem:[%s3389_s18 + $0x50] sm:$0xff] }
 0xa8c   : > { %v1642_v31 = vsel %vm1156_vm10, %v1641_v29, -inf }
 0xa8d   : > { %1643 = vmax.xlane.f32.xlu1 %v1642_v31  ;;  %v2264_v31 = vld [vmem:[%s3389_s18 + $0x40] sm:$0xff] }
 0xa93   : > { %v1580_v32 = vpop.xlane.xlu2 %1579 }
 0xa94   : > { %v1581_v33 = vsub.f32 %v1577_v25, %v1580_v32  ;;  %v2269_v25 = vld [vmem:[%s3389_s18 + $0x68] sm:$0xff]  ;;  %v2410_v32 = vld [vmem:[%s3388_s17 + $0x1] ss:$0 sm:$0xff] }
 0xa96   : > { %v1582_v34 = vmul.f32 1.442695, %v1581_v33 }
 0xa98   : > { %2433 = vpow2.f32 %v1582_v34 }
 0xa9e   : > { %v2434_v35 = vpop.eup %2433 }
 0xa9f   : > { %v1584_v36 = vsel %vm1156_vm10, %v2434_v35, 0.0 }
 0xaa0   : > { %1585 = vadd.xlane.f32.xlu0 %v1584_v36 }
 0xb00   : > { %v1644_v37 = vpop.xlane.xlu1 %1643 }
 0xb01   : > { %v1645_v38 = vsub.f32 %v1641_v29, %v1644_v37  ;;  %v2265_v29 = vld [vmem:[%s3389_s18 + $0x48] sm:$0xff] }
 0xb03   : > { %v1646_v39 = vmul.f32 1.442695, %v1645_v38 }
 0xb05   : > { %2435 = vpow2.f32 %v1646_v39 }
 0xb0b   : > { %v2436_v40 = vpop.eup %2435 }
 0xb0c   : > { %v1648_v41 = vsel %vm1156_vm10, %v2436_v40, 0.0 }
 0xb0d   : > { %1649 = vadd.xlane.f32.xlu1 %v1648_v41 }
 0xb13   : > { %v1586_v13 = vpop.xlane.xlu0 %1585 }
 0xb14   : > { %2437 = vrcp.f32 %v1586_v13 }
 0xb1a   : > { %v2438_v42 = vpop.eup %2437 }
 0xb1b   : > { %v1588_v43 = vmul.f32 %v2438_v42, %v2434_v35 }
 0xb1d   : > { %2253 = vmatmul.msk.f32.vlgmr.msra.gmra.mxu0 %vm1156_vm10, %v1588_v43  ;;  %v2411_v43 = vld [vmem:[%s3390_s19 + $0x1] ss:$0 sm:$0xff] }
 0xb26   : > { %1654 = vrot.lane.b32.xlu1 %v1548_v17, %s2720_s4  ;;  %v2408_v17 = vld [vmem:[%s3385_s14 + $0x1] ss:$0 sm:$0xff]  ;;  %s3458_s4 = sld [smem:[#allocation41_spill]] }
 0xb2c   : > { %s3459_s2 = smov %s3458_s4 }
 0xb2d   : > { %v1951_v3 = vld [vmem:[%s3459_s2 + $0x68] sm:$0xff]  ;;  %v1966_v5 = vld [vmem:[%s3459_s2 + $0xe0] sm:$0xff] }
 0xb80   : > { %v1650_v46 = vpop.xlane.xlu1 %1649 }
 0xb81   : > { %2439 = vrcp.f32 %v1650_v46 }
 0xb87   : > { %v2440_v47 = vpop.eup %2439 }
 0xb88   : > { %v1652_v48 = vmul.f32 %v2440_v47, %v2436_v40 }
 0xb98   : > { %v1655_v49 = vpop.permute.xlu1 %1654 }
 0xb99   : > { %1675 = vmatpush.msrb.mxu2 %v1655_v49 }
 0xb9a   : > { %v1609_v50 = vpop.f32.mrf.mxu0  ;;  %2256 = vmatmul.msk.f32.vlgmr.msrb.gmra.mxu2 %vm1156_vm10, %v1652_v48 }
 0xb9b   : > { %2258 = vmatmul.msk.f32.vlgmr.msrb.gmra.mxu0 %vm1124_vm8, %v1609_v50  ;;  %1834 = vmatpush.msra.mxu2 %v2271_v23  ;;  %v1944_v23 = vld [vmem:[%s3459_s2 + $0x30] sm:$0xff] }
 0xb9d   : > { %1835 = vmatpush.msra.mxu2 %v2270_v24  ;;  %v1959_v24 = vld [vmem:[%s3459_s2 + $0xa8] sm:$0xff] }
 0xb9f   : > { %1836 = vmatpush.msra.mxu2 %v2269_v25 }
 0xba1   : > { %1837 = vmatpush.msra.mxu2 %v2268_v26  ;;  %v1943_v26 = vld [vmem:[%s3459_s2 + $0x28] sm:$0xff] }
 0xba3   : > { %1838 = vmatpush.msra.mxu2 %v2267_v27  ;;  %v1958_v27 = vld [vmem:[%s3459_s2 + $0xa0] sm:$0xff] }
 0xba5   : > { %1839 = vmatpush.msra.mxu2 %v2266_v28 }
 0xba7   : > { %1840 = vmatpush.msra.mxu2 %v2265_v29  ;;  %v1957_v29 = vld [vmem:[%s3459_s2 + $0x98] sm:$0xff] }
 0xba9   : > { %1841 = vmatpush.msra.mxu2 %v2264_v31 }
 0xc18   : > { %v1723_v55 = vpop.f32.mrf.mxu0 }
 0xc1d   : > { %v1677_v53 = vpop.f32.mrf.mxu2 }
 0xc1e   : > { %2257 = vmatmul.msk.f32.vlgmr.msrb.gmra.mxu3 %vm1124_vm8, %v1677_v53  ;;  %v1887_v53 = vld [vmem:[#allocation11 + $0x30] sm:$0xff] }
 0xc1f   : > { %1910 = vmatpush.msra.mxu3 %v1887_v53 }
 0xca1   : > { %v1700_v56 = vpop.f32.mrf.mxu3 }
 0xca2   : > { %v1724_v57 = vadd.f32 %v1723_v55, %v1700_v56  ;;  %v1885_v55 = vld [vmem:[#allocation11 + $0x20] sm:$0xff]  ;;  %v1886_v56 = vld [vmem:[#allocation11 + $0x28] sm:$0xff] }
 0xca3   : > { %1911 = vmatpush.msra.mxu3 %v1885_v55 }
 0xca4   : > { %v1731_v58 = vadd.f32 %v2407_v54, %v1724_v57  ;;  %v1888_v54 = vld [vmem:[#allocation11 + $0x38] sm:$0xff]  ;;  %v1883_v57 = vld [vmem:[#allocation11 + $0x10] sm:$0xff] }
 0xca5   : > { %1930 = vmatpush.msra.mxu0 %v1888_v54  ;;  %1912 = vmatpush.msra.mxu3 %v1883_v57 }
 0xca6   : > { %v1732_v59 = vadd.f32 %v1731_v58, %v3134_v9  ;;  %v1884_v58 = vld [vmem:[#allocation11 + $0x18] sm:$0xff] }
 0xca7   : > { %1931 = vmatpush.msra.mxu0 %v1886_v56 }
 0xca8   : > { %v1737_v60 = vsel %vm992_vm3, %v1732_v59, 0.0 }
 0xca9   : > { %1738 = vadd.xlane.f32.xlu1 %v1737_v60  ;;  %v1882_v60 = vld [vmem:[#allocation11 + $0x8] sm:$0xff]  ;;  %1932 = vmatpush.msra.mxu0 %v1884_v58 }
 0xcab   : > { %1933 = vmatpush.msra.mxu0 %v1882_v60 }
 0xd1c   : > { %v1739_v61 = vpop.xlane.xlu1 %1738 }
 0xd1d   : > { %v1740_v63 = vmul.f32 %v1739_v61, %v3027_v30  ;;  %v1969_v61 = vld [vmem:[%s3458_s4 + $0xf8] sm:$0xff] }
 0xd1f   : > { %v1741_v62 = vsub.f32 %v1732_v59, %v1740_v63  ;;  %v1881_v59 = vld [vmem:[#allocation11] sm:$0xff]  ;;  %v1968_v63 = vld [vmem:[%s3459_s2 + $0xf0] sm:$0xff] }
 0xd20   : > { %1913 = vmatpush.msra.mxu3 %v1881_v59 }
 0xd21   : > { %v1742_v0 = vmul.f32 %v1741_v62, %v1741_v62 }
 0xd22   : > { %1994 = vmatpush.msrb.mxu3 %v1969_v61 }
 0xd23   : > { %v1743_v1 = vsel %vm992_vm3, %v1742_v0, 0.0  ;;  %v1952_v0 = vld [vmem:[%s3459_s2 + $0x70] sm:$0xff] }
 0xd24   : > { %1744 = vadd.xlane.f32.xlu2 %v1743_v1  ;;  %v1967_v1 = vld [vmem:[%s3459_s2 + $0xe8] sm:$0xff]  ;;  %1995 = vmatpush.msrb.mxu3 %v1968_v63 }
 0xd26   : > { %1996 = vmatpush.msrb.mxu3 %v1967_v1 }
 0xd28   : > { %1997 = vmatpush.msrb.mxu3 %v1966_v5 }
 0xd97   : > { %v1745_v6 = vpop.xlane.xlu2 %1744 }
 0xd98   : > { %v1746_v7 = vmul.f32 %v1745_v6, %v3027_v30  ;;  %v1950_v6 = vld [vmem:[%s3459_s2 + $0x60] sm:$0xff] }
 0xd9a   : > { %v1747_v8 = vadd.f32 1e-12, %v1746_v7 }
 0xd9c   : > { %2441 = vrsqrt.f32 %v1747_v8  ;;  %vm1754_vm4 = vweird.f32 %v1747_v8 }
 0xda2   : > { %v2442_v9 = vpop.eup %2441 }
 0xda3   : > { %v1749_v10 = vmul.f32 %v2442_v9, %v1747_v8  ;;  %vm1755_vm2 = vweird.f32 %v2442_v9  ;;  %v1965_v8 = vld [vmem:[%s3459_s2 + $0xd8] sm:$0xff] }
 0xda4   : > { %vm1756_vm5 = vmor %vm1754_vm4, %vm1755_vm2  ;;  %1998 = vmatpush.msrb.mxu3 %v1965_v8 }
 0xda5   : > { %v1750_v11 = vmul.f32 %v2442_v9, %v1749_v10  ;;  %v1948_v10 = vld [vmem:[%s3459_s2 + $0x50] sm:$0xff] }
 0xda7   : > { %v1751_v12 = vmul.f32 0.5, %v1750_v11  ;;  %v1963_v11 = vld [vmem:[%s3459_s2 + $0xc8] sm:$0xff] }
 0xda9   : > { %v1752_v14 = vsub.f32 1.5, %v1751_v12  ;;  %v1947_v12 = vld [vmem:[%s3459_s2 + $0x48] sm:$0xff] }
 0xdab   : > { %v1753_v15 = vmul.f32 %v2442_v9, %v1752_v14  ;;  %v1962_v14 = vld [vmem:[%s3459_s2 + $0xc0] sm:$0xff] }
 0xdad   : > { %v1757_v18 = vsel %vm1756_vm5, %v2442_v9, %v1753_v15  ;;  %v1964_v9 = vld [vmem:[%s3459_s2 + $0xd0] sm:$0xff]  ;;  %v1946_v15 = vld [vmem:[%s3459_s2 + $0x40] sm:$0xff] }
 0xdae   : > { %v1758_v19 = vmul.f32 %v1757_v18, %v1741_v62  ;;  %v1953_v62 = vld [vmem:[%s3459_s2 + $0x78] sm:$0xff]  ;;  %1999 = vmatpush.msrb.mxu3 %v1964_v9 }
 0xdaf   : > { %1974 = vmatpush.msra.mxu1 %v1953_v62  ;;  %v1961_v18 = vld [vmem:[%s3459_s2 + $0xb8] sm:$0xff] }
 0xdb0   : > { %v1762_v21 = vmul.f32 %v2408_v17, %v1758_v19  ;;  %2000 = vmatpush.msrb.mxu3 %v1963_v11 }
 0xdb1   : > { %1975 = vmatpush.msra.mxu1 %v1952_v0 }
 0xdb2   : > { %v1766_v22 = vadd.f32 %v2409_v20, %v1762_v21  ;;  %2001 = vmatpush.msrb.mxu3 %v1962_v14  ;;  %v1945_v20 = vld [vmem:[%s3459_s2 + $0x38] sm:$0xff]  ;;  %v1960_v21 = vld [vmem:[%s3459_s2 + $0xb0] sm:$0xff] }
 0xdb3   : > { %1976 = vmatpush.msra.mxu1 %v1951_v3 }
 0xdb4   : > { %2263 = vmatmul.msk.f32.vlgmr.msrb.gmra.mxu1 %vm992_vm3, %v1766_v22  ;;  %2002 = vmatpush.msrb.mxu3 %v1961_v18 }
 0xdb5   : > { %1977 = vmatpush.msra.mxu1 %v1950_v6 }
 0xdb6   : > { %2003 = vmatpush.msrb.mxu3 %v1960_v21 }
 0xdb8   : > { %2004 = vmatpush.msrb.mxu3 %v1959_v24 }
 0xdba   : > { %2005 = vmatpush.msrb.mxu3 %v1958_v27 }
 0xdbc   : > { %2006 = vmatpush.msrb.mxu3 %v1957_v29 }
 0xe31   : > { %v1797_v33 = vpop.f32.mrf.mxu1 }
 0xe32   : > { %v1798_v34 = vadd.f32 %v2410_v32, %v1797_v33  ;;  %v2412_v32 = vld [vmem:[%s3391_s20 + $0x1] ss:$0 sm:$0xff]  ;;  %v1956_v33 = vld [vmem:[%s3459_s2 + $0x90] sm:$0xff] }
 0xe33   : > { %2007 = vmatpush.msrb.mxu3 %v1956_v33 }
 0xe34   : > { %v1801_v35 = vmul.f32 0.044715, %v1798_v34  ;;  %v1800_v41 = vmul.f32 0.5, %v1798_v34 }
 0xe36   : > { %v1802_v36 = vmul.f32 %v1801_v35, %v1798_v34 }
 0xe38   : > { %v1803_v37 = vmul.f32 %v1802_v36, %v1798_v34  ;;  %v2413_v36 = vld [vmem:[%s3392_s21 + $0x1] ss:$0 sm:$0xff] }
 0xe3a   : > { %v1804_v38 = vadd.f32 %v1803_v37, %v1798_v34 }
 0xe3c   : > { %v1805_v39 = vmul.f32 0.7978846, %v1804_v38 }
 0xe3e   : > { %2443 = vtanh.f32 %v1805_v39  ;;  %v1942_v39 = vld [vmem:[%s3459_s2 + $0x20] sm:$0xff] }
 0xe44   : > { %v2444_v40 = vpop.eup %2443 }
 0xe45   : > { %v1807_v13 = vadd.f32 1.0, %v2444_v40  ;;  %v1955_v40 = vld [vmem:[%s3459_s2 + $0x88] sm:$0xff] }
 0xe46   : > { %2008 = vmatpush.msrb.mxu3 %v1955_v40 }
 0xe47   : > { %v1808_v42 = vmul.f32 %v1807_v13, %v1800_v41  ;;  %v1941_v41 = vld [vmem:[%s3459_s2 + $0x18] sm:$0xff]  ;;  %v1954_v13 = vld [vmem:[%s3459_s2 + $0x80] sm:$0xff] }
 0xe48   : > { %2009 = vmatpush.msrb.mxu3 %v1954_v13 }
 0xe49   : > { %2273 = vmatmul.msk.f32.vlgmr.msra.gmra.mxu2 %vm1395_vm14, %v1808_v42  ;;  %v1940_v42 = vld [vmem:[%s3459_s2 + $0x10] sm:$0xff] }
 0xecc   : > { %v1843_v44 = vpop.f32.mrf.mxu2 }
 0xecd   : > { %v1844_v45 = vadd.f32 %v2411_v43, %v1843_v44  ;;  %v1939_v43 = vld [vmem:[%s3459_s2 + $0x8] sm:$0xff]  ;;  %v1938_v44 = vld [vmem:[%s3459_s2] sm:$0xff] }
 0xecf   : > { %v1846_v46 = vadd.f32 %v1844_v45, %v1766_v22  ;;  %v1889_v45 = vld [vmem:[%s3461_s8] sm:$0x3]  ;;  %s2052_s8 = sshll.u32 %s921_s11, 4  ;;  %s2053_s8 = int_to_ptr.vmem [resolvable:$true] %s2052_s8 }
 0xed1   : > { %v1851_v47 = vsel %vm992_vm3, %v1846_v46, 0.0 }
 0xed2   : > { %1852 = vadd.xlane.f32.xlu2 %v1851_v47 }
 0xf45   : > { %v1853_v48 = vpop.xlane.xlu2 %1852 }
 0xf46   : > { %v1854_v49 = vmul.f32 %v1853_v48, %v3027_v30 }
 0xf48   : > { %v3216_v50 = vsub.f32 %v1846_v46, %v1854_v49  ;;  %v1892_v46 = vperm.slane %v1889_v45, 1  ;;  %v1891_v49 = vperm.slane %v1889_v45, 0 }
 0xf4a   : > { %v1856_v51 = vmul.f32 %v3216_v50, %v3216_v50 }
 0xf4c   : > { %v1857_v52 = vsel %vm992_vm3, %v1856_v51, 0.0 }
 0xf4d   : > { %1858 = vadd.xlane.f32.xlu0 %v1857_v52  ;;  %v2414_v52 = vld [vmem:[%s3462_s24] ss:$0 sm:$0xff]  ;;  %s2641_s24 = sshra.s32 %s2055_s25, 4  ;;  %s2642_s24 = int_to_ptr.hbm [resolvable:$true] %s2641_s24 }
 0xf4e   : > { %s2643_s10 = scalar_lea.hbm %s2642_s24, 8  ;;  %p2648_p3 = scmp.lt.s32.totalorder %s2642_s24, %s3464_s0 }
 0xf4f   : > { %p2644_p0 = scmp.ne.s32.totalorder %s2642_s24, %s2643_s10  ;;  %p2649_p4 = scmp.lt.s32.totalorder %s2647_s9, %s2643_s10 }
 0xf51   : > { %p2645_p1 = pnand %p2644_p0, %p2900_p5  ;;  %p2650_p7 = por %p2649_p4, %p2648_p3 }
 0xf53   : > { %p2646_p2 = pneg %p2645_p1 }
 0xf55   : > { %p2651_p8 = pnand %p2650_p7, %p2646_p2 }
 0xfc0   : > { %v1859_v2 = vpop.xlane.xlu0 %1858 }
 0xfc1   : > { %v1860_v4 = vmul.f32 %v1859_v2, %v3027_v30  ;;  %v1949_v30 = vld [vmem:[%s3459_s2 + $0x58] sm:$0xff] }
 0xfc2   : > { %1978 = vmatpush.msra.mxu1 %v1949_v30 }
 0xfc3   : > { %v1861_v7 = vadd.f32 1e-12, %v1860_v4 }
 0xfc4   : > { %1979 = vmatpush.msra.mxu1 %v1948_v10 }
 0xfc5   : > { %2445 = vrsqrt.f32 %v1861_v7  ;;  %vm1868_vm7 = vweird.f32 %v1861_v7 }
 0xfc6   : > { %1980 = vmatpush.msra.mxu1 %v1947_v12 }
 0xfc8   : > { %1981 = vmatpush.msra.mxu1 %v1946_v15 }
 0xfca   : > { %1982 = vmatpush.msra.mxu1 %v1945_v20 }
 0xfcb   : > { %v2446_v17 = vpop.eup %2445 }
 0xfcc   : > { %v1863_v19 = vmul.f32 %v2446_v17, %v1861_v7  ;;  %1983 = vmatpush.msra.mxu1 %v1944_v23  ;;  %vm1869_vm6 = vweird.f32 %v2446_v17 }
 0xfcd   : > { %vm1870_vm8 = vmor %vm1868_vm7, %vm1869_vm6 }
 0xfce   : > { %v1864_v22 = vmul.f32 %v2446_v17, %v1863_v19  ;;  %1984 = vmatpush.msra.mxu1 %v1943_v26 }
 0xfd0   : > { %v1865_v25 = vmul.f32 0.5, %v1864_v22  ;;  %1985 = vmatpush.msra.mxu1 %v1942_v39 }
 0xfd2   : > { %v1866_v28 = vsub.f32 1.5, %v1865_v25  ;;  %1986 = vmatpush.msra.mxu1 %v1941_v41 }
 0xfd4   : > { %v1867_v31 = vmul.f32 %v2446_v17, %v1866_v28  ;;  %1987 = vmatpush.msra.mxu1 %v1940_v42 }
 0xfd6   : > { %v1871_v34 = vsel %vm1870_vm8, %v2446_v17, %v1867_v31  ;;  %1988 = vmatpush.msra.mxu1 %v1939_v43 }
 0xfd7   : > { %v1872_v35 = vmul.f32 %v1871_v34, %v3216_v50 }
 0xfd8   : > { %1989 = vmatpush.msra.mxu1 %v1938_v44 }
 0xfd9   : > { %v1876_v37 = vmul.f32 %v2412_v32, %v1872_v35 }
 0xfdb   : > { %v1880_v38 = vadd.f32 %v2413_v36, %v1876_v37 }
 0xfdd   : > { %2276 = vmatmul.msk.f32.vlgmr.msra.gmra.mxu3 %vm992_vm3, %v1880_v38  ;;  %2277 = vmatmul.msk.f32.vlgmr.msra.gmra.mxu0 %vm992_vm3, %v1880_v38 }
0x105a   : > { %v1935_v47 = vpop.f32.mrf.mxu0 }
0x105b   : > { %v1936_v48 = vadd.f32 %v1935_v47, %v1892_v46 }
0x105d   : > { %2010 = vmatmul.f32.vlgmr.msrb.gmra.mxu3 %v1936_v48 }
0x1060   : > { %v1915_v50 = vpop.f32.mrf.mxu3 }
0x1061   : > { %v1916_v51 = vadd.f32 %v1915_v50, %v1891_v49 }
0x1063   : > { %1990 = vmatmul.f32.vlgmr.msra.gmra.mxu1 %v1916_v51 }
0x10e0   : > { %v1991_v53 = vpop.f32.mrf.mxu1  ;;  %v2011_v55 = vpop.f32.mrf.mxu3 }
0x10e1   : > { %v1992_v54 = vadd.f32 %v2414_v52, %v1991_v53 }
0x10e3   : > { %v2012_v56 = vadd.f32 %v2011_v55, %v1992_v54 }
0x10e5   : > { %2014 = vst [vmem:[%s921_s11] sm:$0xff] %v2012_v56  ;;  %2015 = vmax.xlane.f32.xlu2 %v2012_v56 }
0x1158   : > { %v2016_v57 = vpop.xlane.xlu2 %2015 }
0x1159   : > { %vm2017_vm3 = vcmp.eq.f32.partialorder %v2012_v56, %v2016_v57 }
0x115a   : > { %v2018_v58 = vsel %vm2017_vm3, %v3020_v16, 128 }
0x115b   : > { %v2020_v59 = vshra.s32 %v2018_v58, 16  ;;  %v2019_v61 = vand.u32 65535, %v2018_v58 }
0x115d   : > { %v2022_v60 = vcvt.s32.f32 %v2020_v59 }
0x115f   : > { %2023 = vmin.xlane.f32.xlu0 %v2022_v60 }
0x1160   : > { %2654 = shalt.err (!%p2651_p8)
}
0x1161   : > { %2306 = dma.vmem_to_hbm [thread:$0]  (%p2900_p5), %s2053_s8, 128, %s2055_s25, %s2036_s1   ;;  %v2021_v63 = vcvt.s32.f32 %v2019_v61  ;;  %vm2033_vm10 = vcmask 7168  }
0x1162   : > { %s3465_s6 = sshll.u32 %s2973_s23, 3  ;;  %s3466_s27 = sld [smem:[#allocation44_spill]] }
0x1168   : > { %s938_s11 = scalar_lea.vmem %s3466_s27, %s3465_s6 }
0x11d2   : > { %v2024_v16 = vpop.xlane.xlu0 %2023 }
0x11d3   : > { %vm2025_vm9 = vcmp.eq.f32.partialorder %v2022_v60, %v2024_v16  ;;  %v2030_v0 = vcvt.f32.s32 %v2024_v16 }
0x11d4   : > { %v2026_v62 = vsel %vm2025_vm9, %v2021_v63, inf }
0x11d5   : > { %2027 = vmin.xlane.f32.xlu2 %v2026_v62  ;;  %v2031_v2 = vshll.u32 %v2030_v0, 16 }
0x1248   : > { %v2028_v1 = vpop.xlane.xlu2 %2027 }
0x1249   : > { %v2029_v3 = vcvt.f32.s32 %v2028_v1 }
0x124b   : > { %v2032_v4 = vadd.s32 %v2031_v2, %v2029_v3 }
0x124d   : > { %2034 = vst.msk [vmem:[%s938_s11] sm:$0xff] %vm2033_vm10, %v2032_v4 }
0x124e PF: > { %s3467_s4 = sld [smem:[#allocation22_spill]] }
0x124f   : > { %s3468_s7 = sld [smem:[#allocation19_spill]] }
0x1254   : > { %p2343_p5 = scmp.ge.s32.totalorder %s3467_s4, 2 }
0x1255   : > { %s2069_s5 = sand.u32 1, %s3468_s7  }
0x1256   : > { %p2328_p9 = pnand %p2343_p5, %p2904_p6  ;;  %s2070_s8 = scalar_lea.sflag [#allocation4], %s2069_s5 }
0x1258   : > { %p2329_p10 = pneg %p2328_p9 }
0x125a   : > { %2688 = dma.done.wait (%p2329_p10), %s2070_s8, 128  }
0x125b   : > { %2690 = vsyncadd (%p2329_p10), %s2070_s8, 4294967168  ;;  %s3470_s30 = sld [smem:[#allocation23_spill]] }
0x125c   : > { %s3471_s7 = sld [smem:[#allocation20_spill]] }
0x125d   : > { %s3472_s4 = sld [smem:[#allocation21_spill]] }
0x125e   : > { %s3473_s8 = sld [smem:[#allocation24_spill]] }
0x1261   : > { %p42_p11 = scmp.ge.s32.totalorder %s3470_s30, 4  }
0x1263   :  { %44 = sbr.rel (!%p42_p11) target bundleno = 26 (0x1a), region = 215 }
0x1268   :  { %2083 = vsyncpa [#allocation3], 1 }
0x1269   :  { %2085 = vsyncpa [#allocation3 + $0x1], 1 }
0x126a   :  { %2086 = vsyncpa [#allocation6], 1 }
0x126b   :  { %2087 = vsyncpa [#allocation9], 1 }
0x126c   :  { %2088 = vsyncpa [#allocation12], 1 }
0x126d   :  { %2089 = vsyncpa [#allocation4], 1 }
0x126e   :  { %2091 = vsyncpa [#allocation4 + $0x1], 1 }

</bundles_post_ra>
